<compile_context>
chip_gen: v6e
topology: v6e:2x2x1
jax: 0.10.0
libtpu: 0.0.40
codegen_flags: <defaults>
</compile_context>

<pallas_src>
import functools

import jax
import jax.numpy as jnp
from jax.experimental import pallas as pl
from jax.experimental.pallas import tpu as pltpu


# ------------------------------ model config ------------------------------- #

B = 2               # batch
C = 3               # RGB channels (CLIP pixel_values)
IMG = 16            # image size
P = 8               # patch size
GRID = IMG // P     # 2
NUM_PATCHES = GRID * GRID        # 4
S = NUM_PATCHES + 1              # +CLS = 5
BS = B * S                       # 10 rows of activation
D = 32              # hidden size
H = 2               # attention heads
DH = D // H         # head dim = 16
INTER = 4 * D       # MLP intermediate = 128
LAYERS = 2
PROJ = 16           # visual projection dim
CPP = C * P * P     # flattened patch length = 192
EMB_IN = CPP + 1 + S             # +CLS one-hot col +S position one-hot cols = 198

# packed "vector slab" layout (rows of a (NVEC, 128) f32 array)
VEC_W = 128
ROW_MASK = 0                     # BS rows: block-diagonal attention mask
ROW_SEL = ROW_MASK + BS          # B rows : one-hot CLS-row selector
ROW_PRE_G = ROW_SEL + B          # pre_layrnorm gamma
ROW_PRE_B = ROW_PRE_G + 1        # pre_layrnorm beta
ROW_POST_G = ROW_PRE_B + 1       # post_layernorm gamma
ROW_POST_B = ROW_POST_G + 1      # post_layernorm beta
ROW_LAYER0 = ROW_POST_B + 1      # = 16 (8-aligned)
# per layer: +0 ln1_g, +1 ln1_b, +2 ln2_g, +3 ln2_b, +4 bo_eff, +5 b1, +6 b2,
#            +7+hd per-head (scaled) q bias
LROWS = 7 + H                    # 9
NVEC = ROW_LAYER0 + LAYERS * LROWS   # 34

OUT_ROWS = BS + B                # packed output slab rows


# ----------------------------- fused Pallas kernel -------------------------- #

def _clip_encoder_kernel(
    x_ref,            # (BS, EMB_IN)       patches + CLS one-hot + pos one-hot
    w_emb_ref,        # (EMB_IN, D)        [patch conv ; class emb ; pos emb]
    vec_ref,          # (NVEC, VEC_W)      packed mask/sel/LN/bias slab
    w_qkv_ref,        # (L*3*H, D, DH)     per-head Q/K/V weights, scale folded into Q
    wo_ref,           # (L, D, D)          out-projection
    w1_ref,           # (L, D, INTER)      MLP fc1
    w2_ref,           # (L, INTER, D)      MLP fc2
    proj_ref,         # (D, VEC_W)         visual_projection, zero-padded to 128 lanes
    o_ref,            # (OUT_ROWS, VEC_W)  rows[0:BS]=projected hidden, rows[BS:]=pooled
):
    f32 = jnp.float32

    def vrow(r, width):
        # static offset-0 slice of one slab row -> (1, width)
        return vec_ref[r:r + 1, 0:width]

    def layernorm(x, g, b):
        mean = jnp.mean(x, axis=-1, keepdims=True)
        xc = x - mean
        var = jnp.mean(xc * xc, axis=-1, keepdims=True)
        return xc * jax.lax.rsqrt(var + 1e-5) * g + b

    mask = vec_ref[ROW_MASK:ROW_MASK + BS, 0:BS]      # (BS, BS)
    sel = vec_ref[ROW_SEL:ROW_SEL + B, 0:BS]          # (B, BS)

    # --- embeddings: one matmul produces patch-emb + CLS row + position add ---
    hs = jnp.dot(x_ref[...], w_emb_ref[...], preferred_element_type=f32)
    hs = layernorm(hs, vrow(ROW_PRE_G, D), vrow(ROW_PRE_B, D))   # pre_layrnorm

    # --- transformer encoder layers (statically unrolled) ---
    for l in range(LAYERS):
        base = ROW_LAYER0 + l * LROWS

        residual = hs
        h = layernorm(hs, vrow(base + 0, D), vrow(base + 1, D))

        heads = []
        for hd in range(H):                         # unrolled over heads
            # head-on-leading-axis weight indexing: no lane slicing
            wq = w_qkv_ref[(l * 3 + 0) * H + hd]    # (D, DH), attn scale folded
            wk = w_qkv_ref[(l * 3 + 1) * H + hd]
            wv = w_qkv_ref[(l * 3 + 2) * H + hd]
            q = jnp.dot(h, wq, preferred_element_type=f32) + vrow(base + 7 + hd, DH)
            k = jnp.dot(h, wk, preferred_element_type=f32)   # k bias cancels in softmax
            v = jnp.dot(h, wv, preferred_element_type=f32)   # v bias folded into bo_eff
            s = jax.lax.dot_general(q, k, (((1,), (1,)), ((), ())),
                                    preferred_element_type=f32) + mask
            s = s - jnp.max(s, axis=-1, keepdims=True)
            p = jnp.exp(s)
            denom = jnp.sum(p, axis=-1, keepdims=True)
            # exact divide (review correctness concern), applied after the PV dot
            heads.append(jnp.dot(p, v, preferred_element_type=f32) / denom)

        oh = jnp.concatenate(heads, axis=-1)                         # (BS, D)
        # single fused out-projection dot; bo_eff = bo + bv @ Wo
        attn = jnp.dot(oh, wo_ref[l], preferred_element_type=f32) + vrow(base + 4, D)
        hs = residual + attn

        residual = hs
        h = layernorm(hs, vrow(base + 2, D), vrow(base + 3, D))
        h1 = jnp.dot(h, w1_ref[l], preferred_element_type=f32) + vrow(base + 5, INTER)
        h1 = h1 * jax.nn.sigmoid(1.702 * h1)                         # quick GELU
        h2 = jnp.dot(h1, w2_ref[l], preferred_element_type=f32) + vrow(base + 6, D)
        hs = residual + h2

    # --- lane-dense packed outputs ---
    proj_w = proj_ref[...]                                           # (D, 128)
    hid = jnp.dot(hs, proj_w, preferred_element_type=f32)            # (BS, 128)

    pooled = jnp.dot(sel, hs, preferred_element_type=f32)            # (B, D) CLS rows
    pooled = layernorm(pooled, vrow(ROW_POST_G, D), vrow(ROW_POST_B, D))
    pe = jnp.dot(pooled, proj_w, preferred_element_type=f32)         # (B, 128)
    # padded lanes are exactly zero, so the 128-lane sum equals the PROJ-lane norm
    norm = jnp.sqrt(jnp.sum(pe * pe, axis=-1, keepdims=True) + 1e-12)
    pe = pe / norm

    o_ref[...] = jnp.concatenate([hid, pe], axis=0).astype(o_ref.dtype)


# ------------------------------- parameters -------------------------------- #

def init_params(key):
    def nrm(k, shape, scale=0.02):
        return (scale * jax.random.normal(k, shape)).astype(jnp.float32)

    keys = iter(jax.random.split(key, 64))
    p = {
        "class_emb": nrm(next(keys), (D,)),
        # Conv2d(3, D, kernel=P, stride=P, bias=False) weight flattened to
        # (C*P*P, D) with (c, kh, kw) row ordering.
        "patch_w": nrm(next(keys), (C * P * P, D)),
        "pos_emb": nrm(next(keys), (S, D)),
        "pre_ln_g": jnp.ones((1, D), jnp.float32),
        "pre_ln_b": jnp.zeros((1, D), jnp.float32),
        "post_ln_g": jnp.ones((1, D), jnp.float32),
        "post_ln_b": jnp.zeros((1, D), jnp.float32),
        "proj_w": nrm(next(keys), (D, PROJ)),     # visual_projection, no bias
        "logit_scale": jnp.array(2.6592, jnp.float32),   # unused in forward
        "layers": [],
    }
    for _ in range(LAYERS):
        lp = {
            "ln1_g": jnp.ones((1, D), jnp.float32),
            "ln1_b": jnp.zeros((1, D), jnp.float32),
            "wq": nrm(next(keys), (D, D)), "bq": nrm(next(keys), (1, D)),
            "wk": nrm(next(keys), (D, D)), "bk": nrm(next(keys), (1, D)),
            "wv": nrm(next(keys), (D, D)), "bv": nrm(next(keys), (1, D)),
            "wo": nrm(next(keys), (D, D)), "bo": nrm(next(keys), (1, D)),
            "ln2_g": jnp.ones((1, D), jnp.float32),
            "ln2_b": jnp.zeros((1, D), jnp.float32),
            "w1": nrm(next(keys), (D, INTER)), "b1": nrm(next(keys), (1, INTER)),
            "w2": nrm(next(keys), (INTER, D)), "b2": nrm(next(keys), (1, D)),
        }
        p["layers"].append(lp)
    return p


def prepare_params(params):
    """One-time layout prep (layout plumbing only, runs outside the kernel):
      * fold CLS token + position embeddings into the embedding matmul,
      * split per-head Q/K/V weights onto a leading axis, fold attn scale into Q,
      * drop the K bias (cancels in softmax) and fold the V bias into the
        out-projection bias (softmax rows sum to 1),
      * pack all tiny vectors + mask + CLS selector into one (NVEC, 128) slab,
      * zero-pad the visual projection to 128 lanes for lane-dense outputs."""
    scale = float(DH) ** -0.5
    layers = params["layers"]

    # [patch conv weight ; class embedding ; position embeddings]
    w_emb = jnp.concatenate(
        [params["patch_w"], params["class_emb"][None, :], params["pos_emb"]],
        axis=0)                                                      # (EMB_IN, D)

    # per-head QKV weight stack, head on leading axis
    qkv_blocks = []
    for lp in layers:
        for name, sc in (("wq", scale), ("wk", 1.0), ("wv", 1.0)):
            w = lp[name] * sc
            for hd in range(H):
                qkv_blocks.append(w[:, hd * DH:(hd + 1) * DH])
    w_qkv = jnp.stack(qkv_blocks, axis=0)                            # (L*3*H, D, DH)

    wo = jnp.stack([lp["wo"] for lp in layers], axis=0)              # (L, D, D)
    w1 = jnp.stack([lp["w1"] for lp in layers], axis=0)              # (L, D, INTER)
    w2 = jnp.stack([lp["w2"] for lp in layers], axis=0)              # (L, INTER, D)

    # lane-dense visual projection
    proj_w_pad = jnp.pad(params["proj_w"], ((0, 0), (0, VEC_W - PROJ)))  # (D, 128)

    # constants
    row_batch = jnp.arange(BS) // S
    attn_mask = jnp.where(row_batch[:, None] == row_batch[None, :],
                          0.0, -1e30).astype(jnp.float32)            # (BS, BS)
    pool_sel = (jnp.arange(BS)[None, :] ==
                (jnp.arange(B) * S)[:, None]).astype(jnp.float32)    # (B, BS)

    def pad128(a):
        a = jnp.asarray(a, jnp.float32)
        if a.ndim == 1:
            a = a[None, :]
        return jnp.pad(a, ((0, 0), (0, VEC_W - a.shape[-1])))

    slab_parts = [pad128(attn_mask), pad128(pool_sel),
                  pad128(params["pre_ln_g"]), pad128(params["pre_ln_b"]),
                  pad128(params["post_ln_g"]), pad128(params["post_ln_b"])]
    for lp in layers:
        bo_eff = lp["bo"] + lp["bv"] @ lp["wo"]      # fold v-proj bias into out bias
        bq_s = lp["bq"] * scale
        slab_parts += [pad128(lp["ln1_g"]), pad128(lp["ln1_b"]),
                       pad128(lp["ln2_g"]), pad128(lp["ln2_b"]),
                       pad128(bo_eff), pad128(lp["b1"]), pad128(lp["b2"])]
        for hd in range(H):
            slab_parts.append(pad128(bq_s[:, hd * DH:(hd + 1) * DH]))
    vec_slab = jnp.concatenate(slab_parts, axis=0)                   # (NVEC, 128)
    assert vec_slab.shape == (NVEC, VEC_W)

    return {
        "w_emb": w_emb, "vec_slab": vec_slab, "w_qkv": w_qkv,
        "wo": wo, "w1": w1, "w2": w2, "proj_w_pad": proj_w_pad,
    }


# ------------------------------- forward pass ------------------------------ #

def clip_image_encoder_forward(pixel_values, prepped):
    """Mirrors CLIP_Image_Encoder.forward (output_attentions=False).

    Returns (projected_image_outputs, projected_hidden_states):
      projected_image_outputs: (B, PROJ), L2-normalized projected pooled output
      projected_hidden_states: (B, S, PROJ), projected last_hidden_state
    """
    x = pixel_values.astype(jnp.float32)

    # Layout plumbing only: NCHW -> patch-major matrix with an extra one-hot
    # CLS column + S one-hot position columns so the single in-kernel
    # embedding matmul also produces the CLS row and the position add.
    patches = (x.reshape(B, C, GRID, P, GRID, P)
                 .transpose(0, 2, 4, 1, 3, 5)          # (B, Gh, Gw, C, P, P)
                 .reshape(B, NUM_PATCHES, CPP))
    x_aug = jnp.zeros((B, S, EMB_IN), jnp.float32)
    x_aug = x_aug.at[:, 1:, :CPP].set(patches)
    x_aug = x_aug.at[:, 0, CPP].set(1.0)
    pos_eye = jnp.broadcast_to(jnp.eye(S, dtype=jnp.float32)[None], (B, S, S))
    x_aug = x_aug.at[:, :, CPP + 1:].set(pos_eye)
    x_aug = x_aug.reshape(BS, EMB_IN)

    vmem = pl.BlockSpec(memory_space=pltpu.MemorySpace.VMEM)
    out_slab = pl.pallas_call(
        _clip_encoder_kernel,
        out_shape=jax.ShapeDtypeStruct((OUT_ROWS, VEC_W), jnp.float32),
        in_specs=[vmem] * 8,
        out_specs=vmem,
    )(
        x_aug, prepped["w_emb"], prepped["vec_slab"], prepped["w_qkv"],
        prepped["wo"], prepped["w1"], prepped["w2"], prepped["proj_w_pad"],
    )

    hidden_proj = out_slab[:BS, :PROJ].reshape(B, S, PROJ)
    pooled_proj = out_slab[BS:BS + B, :PROJ]
    return pooled_proj, hidden_proj


# --------------------------- pure-JAX reference ----------------------------- #

def clip_reference(pixel_values, params):
    """Straightforward (unfused, unfolded) reference of the same forward."""
    f32 = jnp.float32
    hi = jax.lax.Precision.HIGHEST
    x = pixel_values.astype(f32)
    patches = (x.reshape(B, C, GRID, P, GRID, P)
                 .transpose(0, 2, 4, 1, 3, 5)
                 .reshape(B, NUM_PATCHES, CPP))
    patch_emb = jnp.einsum("bnk,kd->bnd", patches, params["patch_w"], precision=hi)
    cls = jnp.broadcast_to(params["class_emb"][None, None, :], (B, 1, D))
    hs = jnp.concatenate([cls, patch_emb], axis=1) + params["pos_emb"][None]

    def ln(t, g, b):
        m = t.mean(-1, keepdims=True)
        tc = t - m
        v = (tc * tc).mean(-1, keepdims=True)
        return tc / jnp.sqrt(v + 1e-5) * g.reshape(-1) + b.reshape(-1)

    hs = ln(hs, params["pre_ln_g"], params["pre_ln_b"])
    scale = float(DH) ** -0.5
    for lp in params["layers"]:
        res = hs
        h = ln(hs, lp["ln1_g"], lp["ln1_b"])
        q = (jnp.einsum("bsd,de->bse", h, lp["wq"], precision=hi) + lp["bq"].reshape(-1)) * scale
        k = jnp.einsum("bsd,de->bse", h, lp["wk"], precision=hi) + lp["bk"].reshape(-1)
        v = jnp.einsum("bsd,de->bse", h, lp["wv"], precision=hi) + lp["bv"].reshape(-1)
        q = q.reshape(B, S, H, DH).transpose(0, 2, 1, 3)
        k = k.reshape(B, S, H, DH).transpose(0, 2, 1, 3)
        v = v.reshape(B, S, H, DH).transpose(0, 2, 1, 3)
        sc = jnp.einsum("bhqd,bhkd->bhqk", q, k, precision=hi)
        p = jax.nn.softmax(sc, axis=-1)
        o = jnp.einsum("bhqk,bhkd->bhqd", p, v, precision=hi)
        o = o.transpose(0, 2, 1, 3).reshape(B, S, D)
        attn = jnp.einsum("bsd,de->bse", o, lp["wo"], precision=hi) + lp["bo"].reshape(-1)
        hs = res + attn
        res = hs
        h = ln(hs, lp["ln2_g"], lp["ln2_b"])
        h1 = jnp.einsum("bsd,di->bsi", h, lp["w1"], precision=hi) + lp["b1"].reshape(-1)
        h1 = h1 * jax.nn.sigmoid(1.702 * h1)
        h2 = jnp.einsum("bsi,id->bsd", h1, lp["w2"], precision=hi) + lp["b2"].reshape(-1)
        hs = res + h2
    hidden_proj = jnp.einsum("bsd,dp->bsp", hs, params["proj_w"], precision=hi)
    pooled = ln(hs[:, 0], params["post_ln_g"], params["post_ln_b"])
    pe = jnp.einsum("bd,dp->bp", pooled, params["proj_w"], precision=hi)
    pe = pe / jnp.linalg.norm(pe, axis=-1, keepdims=True)
    return pe, hidden_proj


# ---------------------------------- main ----------------------------------- #

if __name__ == "__main__":
    key = jax.random.PRNGKey(0)
    k_params, k_pix = jax.random.split(key)
    params = init_params(k_params)
    prepped = prepare_params(params)
    pixel_values = jax.random.normal(k_pix, (B, C, IMG, IMG), dtype=jnp.float32)

    fwd = jax.jit(functools.partial(clip_image_encoder_forward, prepped=prepped))
    proj_pooled, proj_hidden = fwd(pixel_values)
    jax.block_until_ready((proj_pooled, proj_hidden))

    assert proj_pooled.shape == (B, PROJ)
    assert proj_hidden.shape == (B, S, PROJ)

    # pooled outputs are L2-normalized
    norms = jnp.linalg.norm(proj_pooled, axis=-1)
    assert bool(jnp.allclose(norms, 1.0, atol=1e-4))

    # fused kernel matches the plain-JAX reference
    ref_pooled, ref_hidden = clip_reference(pixel_values, params)
    assert bool(jnp.allclose(proj_pooled, ref_pooled, atol=2e-2, rtol=2e-2))
    assert bool(jnp.allclose(proj_hidden, ref_hidden, atol=2e-2, rtol=2e-2))

    print("KERNEL_OK")
</pallas_src>

<mosaic_0001>
module attributes {stable_mosaic.version = 11 : i64} {
  func.func @_clip_encoder_kernel(%arg0: memref<10x198xf32, #tpu.memory_space<vmem>>, %arg1: memref<198x32xf32, #tpu.memory_space<vmem>>, %arg2: memref<34x128xf32, #tpu.memory_space<vmem>>, %arg3: memref<12x32x16xf32, #tpu.memory_space<vmem>>, %arg4: memref<2x32x32xf32, #tpu.memory_space<vmem>>, %arg5: memref<2x32x128xf32, #tpu.memory_space<vmem>>, %arg6: memref<2x128x32xf32, #tpu.memory_space<vmem>>, %arg7: memref<32x128xf32, #tpu.memory_space<vmem>>, %arg8: memref<12x128xf32, #tpu.memory_space<vmem>>) attributes {dimension_semantics = [], scalar_prefetch = 0 : i64, scratch_operands = 0 : i64, tpu.core_type = #tpu.core_type<tc>} {
    %c0 = arith.constant 0 : index
    %c0_0 = arith.constant 0 : index
    %0 = vector.load %arg2[%c0, %c0_0] : memref<34x128xf32, #tpu.memory_space<vmem>>, vector<10x10xf32>
    %c10 = arith.constant 10 : index
    %c0_1 = arith.constant 0 : index
    %1 = vector.load %arg2[%c10, %c0_1] : memref<34x128xf32, #tpu.memory_space<vmem>>, vector<2x10xf32>
    %c0_2 = arith.constant 0 : index
    %c0_3 = arith.constant 0 : index
    %2 = vector.load %arg0[%c0_2, %c0_3] : memref<10x198xf32, #tpu.memory_space<vmem>>, vector<10x198xf32>
    %c0_4 = arith.constant 0 : index
    %c0_5 = arith.constant 0 : index
    %3 = vector.load %arg1[%c0_4, %c0_5] : memref<198x32xf32, #tpu.memory_space<vmem>>, vector<198x32xf32>
    %cst = arith.constant dense<0.000000e+00> : vector<10x32xf32>
    %4 = tpu.matmul %2, %3, %cst {dimension_numbers = #tpu.dot_dimension_numbers<[1], [0], [0], [1], [0, 0, 1, 1], [], []>} : vector<10x198xf32>, vector<198x32xf32>, vector<10x32xf32> -> vector<10x32xf32>
    %c12 = arith.constant 12 : index
    %c0_6 = arith.constant 0 : index
    %5 = vector.load %arg2[%c12, %c0_6] : memref<34x128xf32, #tpu.memory_space<vmem>>, vector<1x32xf32>
    %c13 = arith.constant 13 : index
    %c0_7 = arith.constant 0 : index
    %6 = vector.load %arg2[%c13, %c0_7] : memref<34x128xf32, #tpu.memory_space<vmem>>, vector<1x32xf32>
    %cst_8 = arith.constant dense<0.000000e+00> : vector<10xf32>
    %7 = vector.multi_reduction <add>, %4, %cst_8 [1] : vector<10x32xf32> to vector<10xf32>
    %8 = vector.shape_cast %7 : vector<10xf32> to vector<10x1xf32>
    %cst_9 = arith.constant 3.200000e+01 : f32
    %9 = vector.broadcast %cst_9 : f32 to vector<10x1xf32>
    %10 = arith.divf %8, %9 : vector<10x1xf32>
    %11 = vector.broadcast %10 : vector<10x1xf32> to vector<10x32xf32>
    %12 = arith.subf %4, %11 : vector<10x32xf32>
    %13 = arith.mulf %12, %12 : vector<10x32xf32>
    %cst_10 = arith.constant dense<0.000000e+00> : vector<10xf32>
    %14 = vector.multi_reduction <add>, %13, %cst_10 [1] : vector<10x32xf32> to vector<10xf32>
    %15 = vector.shape_cast %14 : vector<10xf32> to vector<10x1xf32>
    %cst_11 = arith.constant 3.200000e+01 : f32
    %16 = vector.broadcast %cst_11 : f32 to vector<10x1xf32>
    %17 = arith.divf %15, %16 : vector<10x1xf32>
    %cst_12 = arith.constant 9.99999974E-6 : f32
    %18 = vector.broadcast %cst_12 : f32 to vector<10x1xf32>
    %19 = arith.addf %17, %18 : vector<10x1xf32>
    %20 = math.rsqrt %19 : vector<10x1xf32>
    %21 = vector.broadcast %20 : vector<10x1xf32> to vector<10x32xf32>
    %22 = arith.mulf %12, %21 : vector<10x32xf32>
    %23 = vector.broadcast %5 : vector<1x32xf32> to vector<10x32xf32>
    %24 = arith.mulf %22, %23 : vector<10x32xf32>
    %25 = vector.broadcast %6 : vector<1x32xf32> to vector<10x32xf32>
    %26 = arith.addf %24, %25 : vector<10x32xf32>
    %c16 = arith.constant 16 : index
    %c0_13 = arith.constant 0 : index
    %27 = vector.load %arg2[%c16, %c0_13] : memref<34x128xf32, #tpu.memory_space<vmem>>, vector<1x32xf32>
    %c17 = arith.constant 17 : index
    %c0_14 = arith.constant 0 : index
    %28 = vector.load %arg2[%c17, %c0_14] : memref<34x128xf32, #tpu.memory_space<vmem>>, vector<1x32xf32>
    %cst_15 = arith.constant dense<0.000000e+00> : vector<10xf32>
    %29 = vector.multi_reduction <add>, %26, %cst_15 [1] : vector<10x32xf32> to vector<10xf32>
    %30 = vector.shape_cast %29 : vector<10xf32> to vector<10x1xf32>
    %cst_16 = arith.constant 3.200000e+01 : f32
    %31 = vector.broadcast %cst_16 : f32 to vector<10x1xf32>
    %32 = arith.divf %30, %31 : vector<10x1xf32>
    %33 = vector.broadcast %32 : vector<10x1xf32> to vector<10x32xf32>
    %34 = arith.subf %26, %33 : vector<10x32xf32>
    %35 = arith.mulf %34, %34 : vector<10x32xf32>
    %cst_17 = arith.constant dense<0.000000e+00> : vector<10xf32>
    %36 = vector.multi_reduction <add>, %35, %cst_17 [1] : vector<10x32xf32> to vector<10xf32>
    %37 = vector.shape_cast %36 : vector<10xf32> to vector<10x1xf32>
    %cst_18 = arith.constant 3.200000e+01 : f32
    %38 = vector.broadcast %cst_18 : f32 to vector<10x1xf32>
    %39 = arith.divf %37, %38 : vector<10x1xf32>
    %cst_19 = arith.constant 9.99999974E-6 : f32
    %40 = vector.broadcast %cst_19 : f32 to vector<10x1xf32>
    %41 = arith.addf %39, %40 : vector<10x1xf32>
    %42 = math.rsqrt %41 : vector<10x1xf32>
    %43 = vector.broadcast %42 : vector<10x1xf32> to vector<10x32xf32>
    %44 = arith.mulf %34, %43 : vector<10x32xf32>
    %45 = vector.broadcast %27 : vector<1x32xf32> to vector<10x32xf32>
    %46 = arith.mulf %44, %45 : vector<10x32xf32>
    %47 = vector.broadcast %28 : vector<1x32xf32> to vector<10x32xf32>
    %48 = arith.addf %46, %47 : vector<10x32xf32>
    %c0_20 = arith.constant 0 : index
    %c0_21 = arith.constant 0 : index
    %c0_22 = arith.constant 0 : index
    %49 = vector.load %arg3[%c0_20, %c0_21, %c0_22] : memref<12x32x16xf32, #tpu.memory_space<vmem>>, vector<1x32x16xf32>
    %50 = vector.shape_cast %49 : vector<1x32x16xf32> to vector<32x16xf32>
    %c2 = arith.constant 2 : index
    %c0_23 = arith.constant 0 : index
    %c0_24 = arith.constant 0 : index
    %51 = vector.load %arg3[%c2, %c0_23, %c0_24] : memref<12x32x16xf32, #tpu.memory_space<vmem>>, vector<1x32x16xf32>
    %52 = vector.shape_cast %51 : vector<1x32x16xf32> to vector<32x16xf32>
    %c4 = arith.constant 4 : index
    %c0_25 = arith.constant 0 : index
    %c0_26 = arith.constant 0 : index
    %53 = vector.load %arg3[%c4, %c0_25, %c0_26] : memref<12x32x16xf32, #tpu.memory_space<vmem>>, vector<1x32x16xf32>
    %54 = vector.shape_cast %53 : vector<1x32x16xf32> to vector<32x16xf32>
    %cst_27 = arith.constant dense<0.000000e+00> : vector<10x16xf32>
    %55 = tpu.matmul %48, %50, %cst_27 {dimension_numbers = #tpu.dot_dimension_numbers<[1], [0], [0], [1], [0, 0, 1, 1], [], []>} : vector<10x32xf32>, vector<32x16xf32>, vector<10x16xf32> -> vector<10x16xf32>
    %c23 = arith.constant 23 : index
    %c0_28 = arith.constant 0 : index
    %56 = vector.load %arg2[%c23, %c0_28] : memref<34x128xf32, #tpu.memory_space<vmem>>, vector<1x16xf32>
    %57 = vector.broadcast %56 : vector<1x16xf32> to vector<10x16xf32>
    %58 = arith.addf %55, %57 : vector<10x16xf32>
    %cst_29 = arith.constant dense<0.000000e+00> : vector<10x16xf32>
    %59 = tpu.matmul %48, %52, %cst_29 {dimension_numbers = #tpu.dot_dimension_numbers<[1], [0], [0], [1], [0, 0, 1, 1], [], []>} : vector<10x32xf32>, vector<32x16xf32>, vector<10x16xf32> -> vector<10x16xf32>
    %cst_30 = arith.constant dense<0.000000e+00> : vector<10x16xf32>
    %60 = tpu.matmul %48, %54, %cst_30 {dimension_numbers = #tpu.dot_dimension_numbers<[1], [0], [0], [1], [0, 0, 1, 1], [], []>} : vector<10x32xf32>, vector<32x16xf32>, vector<10x16xf32> -> vector<10x16xf32>
    %cst_31 = arith.constant dense<0.000000e+00> : vector<10x10xf32>
    %61 = tpu.matmul %58, %59, %cst_31 {dimension_numbers = #tpu.dot_dimension_numbers<[1], [1], [0], [0], [0, 0, 1, 0], [], []>} : vector<10x16xf32>, vector<10x16xf32>, vector<10x10xf32> -> vector<10x10xf32>
    %62 = arith.addf %61, %0 : vector<10x10xf32>
    %cst_32 = arith.constant dense<0xFF800000> : vector<10xf32>
    %63 = vector.multi_reduction <maximumf>, %62, %cst_32 [1] : vector<10x10xf32> to vector<10xf32>
    %64 = vector.shape_cast %63 : vector<10xf32> to vector<10x1xf32>
    %65 = vector.broadcast %64 : vector<10x1xf32> to vector<10x10xf32>
    %66 = arith.subf %62, %65 : vector<10x10xf32>
    %67 = math.exp %66 : vector<10x10xf32>
    %cst_33 = arith.constant dense<0.000000e+00> : vector<10xf32>
    %68 = vector.multi_reduction <add>, %67, %cst_33 [1] : vector<10x10xf32> to vector<10xf32>
    %69 = vector.shape_cast %68 : vector<10xf32> to vector<10x1xf32>
    %cst_34 = arith.constant dense<0.000000e+00> : vector<10x16xf32>
    %70 = tpu.matmul %67, %60, %cst_34 {dimension_numbers = #tpu.dot_dimension_numbers<[1], [0], [0], [1], [0, 0, 1, 1], [], []>} : vector<10x10xf32>, vector<10x16xf32>, vector<10x16xf32> -> vector<10x16xf32>
    %71 = vector.broadcast %69 : vector<10x1xf32> to vector<10x16xf32>
    %72 = arith.divf %70, %71 : vector<10x16xf32>
    %c1 = arith.constant 1 : index
    %c0_35 = arith.constant 0 : index
    %c0_36 = arith.constant 0 : index
    %73 = vector.load %arg3[%c1, %c0_35, %c0_36] : memref<12x32x16xf32, #tpu.memory_space<vmem>>, vector<1x32x16xf32>
    %74 = vector.shape_cast %73 : vector<1x32x16xf32> to vector<32x16xf32>
    %c3 = arith.constant 3 : index
    %c0_37 = arith.constant 0 : index
    %c0_38 = arith.constant 0 : index
    %75 = vector.load %arg3[%c3, %c0_37, %c0_38] : memref<12x32x16xf32, #tpu.memory_space<vmem>>, vector<1x32x16xf32>
    %76 = vector.shape_cast %75 : vector<1x32x16xf32> to vector<32x16xf32>
    %c5 = arith.constant 5 : index
    %c0_39 = arith.constant 0 : index
    %c0_40 = arith.constant 0 : index
    %77 = vector.load %arg3[%c5, %c0_39, %c0_40] : memref<12x32x16xf32, #tpu.memory_space<vmem>>, vector<1x32x16xf32>
    %78 = vector.shape_cast %77 : vector<1x32x16xf32> to vector<32x16xf32>
    %cst_41 = arith.constant dense<0.000000e+00> : vector<10x16xf32>
    %79 = tpu.matmul %48, %74, %cst_41 {dimension_numbers = #tpu.dot_dimension_numbers<[1], [0], [0], [1], [0, 0, 1, 1], [], []>} : vector<10x32xf32>, vector<32x16xf32>, vector<10x16xf32> -> vector<10x16xf32>
    %c24 = arith.constant 24 : index
    %c0_42 = arith.constant 0 : index
    %80 = vector.load %arg2[%c24, %c0_42] : memref<34x128xf32, #tpu.memory_space<vmem>>, vector<1x16xf32>
    %81 = vector.broadcast %80 : vector<1x16xf32> to vector<10x16xf32>
    %82 = arith.addf %79, %81 : vector<10x16xf32>
    %cst_43 = arith.constant dense<0.000000e+00> : vector<10x16xf32>
    %83 = tpu.matmul %48, %76, %cst_43 {dimension_numbers = #tpu.dot_dimension_numbers<[1], [0], [0], [1], [0, 0, 1, 1], [], []>} : vector<10x32xf32>, vector<32x16xf32>, vector<10x16xf32> -> vector<10x16xf32>
    %cst_44 = arith.constant dense<0.000000e+00> : vector<10x16xf32>
    %84 = tpu.matmul %48, %78, %cst_44 {dimension_numbers = #tpu.dot_dimension_numbers<[1], [0], [0], [1], [0, 0, 1, 1], [], []>} : vector<10x32xf32>, vector<32x16xf32>, vector<10x16xf32> -> vector<10x16xf32>
    %cst_45 = arith.constant dense<0.000000e+00> : vector<10x10xf32>
    %85 = tpu.matmul %82, %83, %cst_45 {dimension_numbers = #tpu.dot_dimension_numbers<[1], [1], [0], [0], [0, 0, 1, 0], [], []>} : vector<10x16xf32>, vector<10x16xf32>, vector<10x10xf32> -> vector<10x10xf32>
    %86 = arith.addf %85, %0 : vector<10x10xf32>
    %cst_46 = arith.constant dense<0xFF800000> : vector<10xf32>
    %87 = vector.multi_reduction <maximumf>, %86, %cst_46 [1] : vector<10x10xf32> to vector<10xf32>
    %88 = vector.shape_cast %87 : vector<10xf32> to vector<10x1xf32>
    %89 = vector.broadcast %88 : vector<10x1xf32> to vector<10x10xf32>
    %90 = arith.subf %86, %89 : vector<10x10xf32>
    %91 = math.exp %90 : vector<10x10xf32>
    %cst_47 = arith.constant dense<0.000000e+00> : vector<10xf32>
    %92 = vector.multi_reduction <add>, %91, %cst_47 [1] : vector<10x10xf32> to vector<10xf32>
    %93 = vector.shape_cast %92 : vector<10xf32> to vector<10x1xf32>
    %cst_48 = arith.constant dense<0.000000e+00> : vector<10x16xf32>
    %94 = tpu.matmul %91, %84, %cst_48 {dimension_numbers = #tpu.dot_dimension_numbers<[1], [0], [0], [1], [0, 0, 1, 1], [], []>} : vector<10x10xf32>, vector<10x16xf32>, vector<10x16xf32> -> vector<10x16xf32>
    %95 = vector.broadcast %93 : vector<10x1xf32> to vector<10x16xf32>
    %96 = arith.divf %94, %95 : vector<10x16xf32>
    %97 = tpu.concatenate %72, %96 in 1 : vector<10x16xf32>, vector<10x16xf32> -> vector<10x32xf32>
    %c0_49 = arith.constant 0 : index
    %c0_50 = arith.constant 0 : index
    %c0_51 = arith.constant 0 : index
    %98 = vector.load %arg4[%c0_49, %c0_50, %c0_51] : memref<2x32x32xf32, #tpu.memory_space<vmem>>, vector<1x32x32xf32>
    %99 = vector.shape_cast %98 : vector<1x32x32xf32> to vector<32x32xf32>
    %cst_52 = arith.constant dense<0.000000e+00> : vector<10x32xf32>
    %100 = tpu.matmul %97, %99, %cst_52 {dimension_numbers = #tpu.dot_dimension_numbers<[1], [0], [0], [1], [0, 0, 1, 1], [], []>} : vector<10x32xf32>, vector<32x32xf32>, vector<10x32xf32> -> vector<10x32xf32>
    %c20 = arith.constant 20 : index
    %c0_53 = arith.constant 0 : index
    %101 = vector.load %arg2[%c20, %c0_53] : memref<34x128xf32, #tpu.memory_space<vmem>>, vector<1x32xf32>
    %102 = vector.broadcast %101 : vector<1x32xf32> to vector<10x32xf32>
    %103 = arith.addf %100, %102 : vector<10x32xf32>
    %104 = arith.addf %26, %103 : vector<10x32xf32>
    %c18 = arith.constant 18 : index
    %c0_54 = arith.constant 0 : index
    %105 = vector.load %arg2[%c18, %c0_54] : memref<34x128xf32, #tpu.memory_space<vmem>>, vector<1x32xf32>
    %c19 = arith.constant 19 : index
    %c0_55 = arith.constant 0 : index
    %106 = vector.load %arg2[%c19, %c0_55] : memref<34x128xf32, #tpu.memory_space<vmem>>, vector<1x32xf32>
    %cst_56 = arith.constant dense<0.000000e+00> : vector<10xf32>
    %107 = vector.multi_reduction <add>, %104, %cst_56 [1] : vector<10x32xf32> to vector<10xf32>
    %108 = vector.shape_cast %107 : vector<10xf32> to vector<10x1xf32>
    %cst_57 = arith.constant 3.200000e+01 : f32
    %109 = vector.broadcast %cst_57 : f32 to vector<10x1xf32>
    %110 = arith.divf %108, %109 : vector<10x1xf32>
    %111 = vector.broadcast %110 : vector<10x1xf32> to vector<10x32xf32>
    %112 = arith.subf %104, %111 : vector<10x32xf32>
    %113 = arith.mulf %112, %112 : vector<10x32xf32>
    %cst_58 = arith.constant dense<0.000000e+00> : vector<10xf32>
    %114 = vector.multi_reduction <add>, %113, %cst_58 [1] : vector<10x32xf32> to vector<10xf32>
    %115 = vector.shape_cast %114 : vector<10xf32> to vector<10x1xf32>
    %cst_59 = arith.constant 3.200000e+01 : f32
    %116 = vector.broadcast %cst_59 : f32 to vector<10x1xf32>
    %117 = arith.divf %115, %116 : vector<10x1xf32>
    %cst_60 = arith.constant 9.99999974E-6 : f32
    %118 = vector.broadcast %cst_60 : f32 to vector<10x1xf32>
    %119 = arith.addf %117, %118 : vector<10x1xf32>
    %120 = math.rsqrt %119 : vector<10x1xf32>
    %121 = vector.broadcast %120 : vector<10x1xf32> to vector<10x32xf32>
    %122 = arith.mulf %112, %121 : vector<10x32xf32>
    %123 = vector.broadcast %105 : vector<1x32xf32> to vector<10x32xf32>
    %124 = arith.mulf %122, %123 : vector<10x32xf32>
    %125 = vector.broadcast %106 : vector<1x32xf32> to vector<10x32xf32>
    %126 = arith.addf %124, %125 : vector<10x32xf32>
    %c0_61 = arith.constant 0 : index
    %c0_62 = arith.constant 0 : index
    %c0_63 = arith.constant 0 : index
    %127 = vector.load %arg5[%c0_61, %c0_62, %c0_63] : memref<2x32x128xf32, #tpu.memory_space<vmem>>, vector<1x32x128xf32>
    %128 = vector.shape_cast %127 : vector<1x32x128xf32> to vector<32x128xf32>
    %cst_64 = arith.constant dense<0.000000e+00> : vector<10x128xf32>
    %129 = tpu.matmul %126, %128, %cst_64 {dimension_numbers = #tpu.dot_dimension_numbers<[1], [0], [0], [1], [0, 0, 1, 1], [], []>} : vector<10x32xf32>, vector<32x128xf32>, vector<10x128xf32> -> vector<10x128xf32>
    %c21 = arith.constant 21 : index
    %c0_65 = arith.constant 0 : index
    %130 = vector.load %arg2[%c21, %c0_65] : memref<34x128xf32, #tpu.memory_space<vmem>>, vector<1x128xf32>
    %131 = vector.broadcast %130 : vector<1x128xf32> to vector<10x128xf32>
    %132 = arith.addf %129, %131 : vector<10x128xf32>
    %cst_66 = arith.constant 1.702000e+00 : f32
    %133 = vector.broadcast %cst_66 : f32 to vector<10x128xf32>
    %134 = arith.mulf %133, %132 : vector<10x128xf32>
    %135 = arith.negf %134 : vector<10x128xf32>
    %136 = math.exp %135 : vector<10x128xf32>
    %cst_67 = arith.constant 1.000000e+00 : f32
    %137 = vector.broadcast %cst_67 : f32 to vector<10x128xf32>
    %138 = arith.addf %137, %136 : vector<10x128xf32>
    %139 = arith.divf %137, %138 : vector<10x128xf32>
    %140 = arith.mulf %132, %139 : vector<10x128xf32>
    %c0_68 = arith.constant 0 : index
    %c0_69 = arith.constant 0 : index
    %c0_70 = arith.constant 0 : index
    %141 = vector.load %arg6[%c0_68, %c0_69, %c0_70] : memref<2x128x32xf32, #tpu.memory_space<vmem>>, vector<1x128x32xf32>
    %142 = vector.shape_cast %141 : vector<1x128x32xf32> to vector<128x32xf32>
    %cst_71 = arith.constant dense<0.000000e+00> : vector<10x32xf32>
    %143 = tpu.matmul %140, %142, %cst_71 {dimension_numbers = #tpu.dot_dimension_numbers<[1], [0], [0], [1], [0, 0, 1, 1], [], []>} : vector<10x128xf32>, vector<128x32xf32>, vector<10x32xf32> -> vector<10x32xf32>
    %c22 = arith.constant 22 : index
    %c0_72 = arith.constant 0 : index
    %144 = vector.load %arg2[%c22, %c0_72] : memref<34x128xf32, #tpu.memory_space<vmem>>, vector<1x32xf32>
    %145 = vector.broadcast %144 : vector<1x32xf32> to vector<10x32xf32>
    %146 = arith.addf %143, %145 : vector<10x32xf32>
    %147 = arith.addf %104, %146 : vector<10x32xf32>
    %c25 = arith.constant 25 : index
    %c0_73 = arith.constant 0 : index
    %148 = vector.load %arg2[%c25, %c0_73] : memref<34x128xf32, #tpu.memory_space<vmem>>, vector<1x32xf32>
    %c26 = arith.constant 26 : index
    %c0_74 = arith.constant 0 : index
    %149 = vector.load %arg2[%c26, %c0_74] : memref<34x128xf32, #tpu.memory_space<vmem>>, vector<1x32xf32>
    %cst_75 = arith.constant dense<0.000000e+00> : vector<10xf32>
    %150 = vector.multi_reduction <add>, %147, %cst_75 [1] : vector<10x32xf32> to vector<10xf32>
    %151 = vector.shape_cast %150 : vector<10xf32> to vector<10x1xf32>
    %cst_76 = arith.constant 3.200000e+01 : f32
    %152 = vector.broadcast %cst_76 : f32 to vector<10x1xf32>
    %153 = arith.divf %151, %152 : vector<10x1xf32>
    %154 = vector.broadcast %153 : vector<10x1xf32> to vector<10x32xf32>
    %155 = arith.subf %147, %154 : vector<10x32xf32>
    %156 = arith.mulf %155, %155 : vector<10x32xf32>
    %cst_77 = arith.constant dense<0.000000e+00> : vector<10xf32>
    %157 = vector.multi_reduction <add>, %156, %cst_77 [1] : vector<10x32xf32> to vector<10xf32>
    %158 = vector.shape_cast %157 : vector<10xf32> to vector<10x1xf32>
    %cst_78 = arith.constant 3.200000e+01 : f32
    %159 = vector.broadcast %cst_78 : f32 to vector<10x1xf32>
    %160 = arith.divf %158, %159 : vector<10x1xf32>
    %cst_79 = arith.constant 9.99999974E-6 : f32
    %161 = vector.broadcast %cst_79 : f32 to vector<10x1xf32>
    %162 = arith.addf %160, %161 : vector<10x1xf32>
    %163 = math.rsqrt %162 : vector<10x1xf32>
    %164 = vector.broadcast %163 : vector<10x1xf32> to vector<10x32xf32>
    %165 = arith.mulf %155, %164 : vector<10x32xf32>
    %166 = vector.broadcast %148 : vector<1x32xf32> to vector<10x32xf32>
    %167 = arith.mulf %165, %166 : vector<10x32xf32>
    %168 = vector.broadcast %149 : vector<1x32xf32> to vector<10x32xf32>
    %169 = arith.addf %167, %168 : vector<10x32xf32>
    %c6 = arith.constant 6 : index
    %c0_80 = arith.constant 0 : index
    %c0_81 = arith.constant 0 : index
    %170 = vector.load %arg3[%c6, %c0_80, %c0_81] : memref<12x32x16xf32, #tpu.memory_space<vmem>>, vector<1x32x16xf32>
    %171 = vector.shape_cast %170 : vector<1x32x16xf32> to vector<32x16xf32>
    %c8 = arith.constant 8 : index
    %c0_82 = arith.constant 0 : index
    %c0_83 = arith.constant 0 : index
    %172 = vector.load %arg3[%c8, %c0_82, %c0_83] : memref<12x32x16xf32, #tpu.memory_space<vmem>>, vector<1x32x16xf32>
    %173 = vector.shape_cast %172 : vector<1x32x16xf32> to vector<32x16xf32>
    %c10_84 = arith.constant 10 : index
    %c0_85 = arith.constant 0 : index
    %c0_86 = arith.constant 0 : index
    %174 = vector.load %arg3[%c10_84, %c0_85, %c0_86] : memref<12x32x16xf32, #tpu.memory_space<vmem>>, vector<1x32x16xf32>
    %175 = vector.shape_cast %174 : vector<1x32x16xf32> to vector<32x16xf32>
    %cst_87 = arith.constant dense<0.000000e+00> : vector<10x16xf32>
    %176 = tpu.matmul %169, %171, %cst_87 {dimension_numbers = #tpu.dot_dimension_numbers<[1], [0], [0], [1], [0, 0, 1, 1], [], []>} : vector<10x32xf32>, vector<32x16xf32>, vector<10x16xf32> -> vector<10x16xf32>
    %c32 = arith.constant 32 : index
    %c0_88 = arith.constant 0 : index
    %177 = vector.load %arg2[%c32, %c0_88] : memref<34x128xf32, #tpu.memory_space<vmem>>, vector<1x16xf32>
    %178 = vector.broadcast %177 : vector<1x16xf32> to vector<10x16xf32>
    %179 = arith.addf %176, %178 : vector<10x16xf32>
    %cst_89 = arith.constant dense<0.000000e+00> : vector<10x16xf32>
    %180 = tpu.matmul %169, %173, %cst_89 {dimension_numbers = #tpu.dot_dimension_numbers<[1], [0], [0], [1], [0, 0, 1, 1], [], []>} : vector<10x32xf32>, vector<32x16xf32>, vector<10x16xf32> -> vector<10x16xf32>
    %cst_90 = arith.constant dense<0.000000e+00> : vector<10x16xf32>
    %181 = tpu.matmul %169, %175, %cst_90 {dimension_numbers = #tpu.dot_dimension_numbers<[1], [0], [0], [1], [0, 0, 1, 1], [], []>} : vector<10x32xf32>, vector<32x16xf32>, vector<10x16xf32> -> vector<10x16xf32>
    %cst_91 = arith.constant dense<0.000000e+00> : vector<10x10xf32>
    %182 = tpu.matmul %179, %180, %cst_91 {dimension_numbers = #tpu.dot_dimension_numbers<[1], [1], [0], [0], [0, 0, 1, 0], [], []>} : vector<10x16xf32>, vector<10x16xf32>, vector<10x10xf32> -> vector<10x10xf32>
    %183 = arith.addf %182, %0 : vector<10x10xf32>
    %cst_92 = arith.constant dense<0xFF800000> : vector<10xf32>
    %184 = vector.multi_reduction <maximumf>, %183, %cst_92 [1] : vector<10x10xf32> to vector<10xf32>
    %185 = vector.shape_cast %184 : vector<10xf32> to vector<10x1xf32>
    %186 = vector.broadcast %185 : vector<10x1xf32> to vector<10x10xf32>
    %187 = arith.subf %183, %186 : vector<10x10xf32>
    %188 = math.exp %187 : vector<10x10xf32>
    %cst_93 = arith.constant dense<0.000000e+00> : vector<10xf32>
    %189 = vector.multi_reduction <add>, %188, %cst_93 [1] : vector<10x10xf32> to vector<10xf32>
    %190 = vector.shape_cast %189 : vector<10xf32> to vector<10x1xf32>
    %cst_94 = arith.constant dense<0.000000e+00> : vector<10x16xf32>
    %191 = tpu.matmul %188, %181, %cst_94 {dimension_numbers = #tpu.dot_dimension_numbers<[1], [0], [0], [1], [0, 0, 1, 1], [], []>} : vector<10x10xf32>, vector<10x16xf32>, vector<10x16xf32> -> vector<10x16xf32>
    %192 = vector.broadcast %190 : vector<10x1xf32> to vector<10x16xf32>
    %193 = arith.divf %191, %192 : vector<10x16xf32>
    %c7 = arith.constant 7 : index
    %c0_95 = arith.constant 0 : index
    %c0_96 = arith.constant 0 : index
    %194 = vector.load %arg3[%c7, %c0_95, %c0_96] : memref<12x32x16xf32, #tpu.memory_space<vmem>>, vector<1x32x16xf32>
    %195 = vector.shape_cast %194 : vector<1x32x16xf32> to vector<32x16xf32>
    %c9 = arith.constant 9 : index
    %c0_97 = arith.constant 0 : index
    %c0_98 = arith.constant 0 : index
    %196 = vector.load %arg3[%c9, %c0_97, %c0_98] : memref<12x32x16xf32, #tpu.memory_space<vmem>>, vector<1x32x16xf32>
    %197 = vector.shape_cast %196 : vector<1x32x16xf32> to vector<32x16xf32>
    %c11 = arith.constant 11 : index
    %c0_99 = arith.constant 0 : index
    %c0_100 = arith.constant 0 : index
    %198 = vector.load %arg3[%c11, %c0_99, %c0_100] : memref<12x32x16xf32, #tpu.memory_space<vmem>>, vector<1x32x16xf32>
    %199 = vector.shape_cast %198 : vector<1x32x16xf32> to vector<32x16xf32>
    %cst_101 = arith.constant dense<0.000000e+00> : vector<10x16xf32>
    %200 = tpu.matmul %169, %195, %cst_101 {dimension_numbers = #tpu.dot_dimension_numbers<[1], [0], [0], [1], [0, 0, 1, 1], [], []>} : vector<10x32xf32>, vector<32x16xf32>, vector<10x16xf32> -> vector<10x16xf32>
    %c33 = arith.constant 33 : index
    %c0_102 = arith.constant 0 : index
    %201 = vector.load %arg2[%c33, %c0_102] : memref<34x128xf32, #tpu.memory_space<vmem>>, vector<1x16xf32>
    %202 = vector.broadcast %201 : vector<1x16xf32> to vector<10x16xf32>
    %203 = arith.addf %200, %202 : vector<10x16xf32>
    %cst_103 = arith.constant dense<0.000000e+00> : vector<10x16xf32>
    %204 = tpu.matmul %169, %197, %cst_103 {dimension_numbers = #tpu.dot_dimension_numbers<[1], [0], [0], [1], [0, 0, 1, 1], [], []>} : vector<10x32xf32>, vector<32x16xf32>, vector<10x16xf32> -> vector<10x16xf32>
    %cst_104 = arith.constant dense<0.000000e+00> : vector<10x16xf32>
    %205 = tpu.matmul %169, %199, %cst_104 {dimension_numbers = #tpu.dot_dimension_numbers<[1], [0], [0], [1], [0, 0, 1, 1], [], []>} : vector<10x32xf32>, vector<32x16xf32>, vector<10x16xf32> -> vector<10x16xf32>
    %cst_105 = arith.constant dense<0.000000e+00> : vector<10x10xf32>
    %206 = tpu.matmul %203, %204, %cst_105 {dimension_numbers = #tpu.dot_dimension_numbers<[1], [1], [0], [0], [0, 0, 1, 0], [], []>} : vector<10x16xf32>, vector<10x16xf32>, vector<10x10xf32> -> vector<10x10xf32>
    %207 = arith.addf %206, %0 : vector<10x10xf32>
    %cst_106 = arith.constant dense<0xFF800000> : vector<10xf32>
    %208 = vector.multi_reduction <maximumf>, %207, %cst_106 [1] : vector<10x10xf32> to vector<10xf32>
    %209 = vector.shape_cast %208 : vector<10xf32> to vector<10x1xf32>
    %210 = vector.broadcast %209 : vector<10x1xf32> to vector<10x10xf32>
    %211 = arith.subf %207, %210 : vector<10x10xf32>
    %212 = math.exp %211 : vector<10x10xf32>
    %cst_107 = arith.constant dense<0.000000e+00> : vector<10xf32>
    %213 = vector.multi_reduction <add>, %212, %cst_107 [1] : vector<10x10xf32> to vector<10xf32>
    %214 = vector.shape_cast %213 : vector<10xf32> to vector<10x1xf32>
    %cst_108 = arith.constant dense<0.000000e+00> : vector<10x16xf32>
    %215 = tpu.matmul %212, %205, %cst_108 {dimension_numbers = #tpu.dot_dimension_numbers<[1], [0], [0], [1], [0, 0, 1, 1], [], []>} : vector<10x10xf32>, vector<10x16xf32>, vector<10x16xf32> -> vector<10x16xf32>
    %216 = vector.broadcast %214 : vector<10x1xf32> to vector<10x16xf32>
    %217 = arith.divf %215, %216 : vector<10x16xf32>
    %218 = tpu.concatenate %193, %217 in 1 : vector<10x16xf32>, vector<10x16xf32> -> vector<10x32xf32>
    %c1_109 = arith.constant 1 : index
    %c0_110 = arith.constant 0 : index
    %c0_111 = arith.constant 0 : index
    %219 = vector.load %arg4[%c1_109, %c0_110, %c0_111] : memref<2x32x32xf32, #tpu.memory_space<vmem>>, vector<1x32x32xf32>
    %220 = vector.shape_cast %219 : vector<1x32x32xf32> to vector<32x32xf32>
    %cst_112 = arith.constant dense<0.000000e+00> : vector<10x32xf32>
    %221 = tpu.matmul %218, %220, %cst_112 {dimension_numbers = #tpu.dot_dimension_numbers<[1], [0], [0], [1], [0, 0, 1, 1], [], []>} : vector<10x32xf32>, vector<32x32xf32>, vector<10x32xf32> -> vector<10x32xf32>
    %c29 = arith.constant 29 : index
    %c0_113 = arith.constant 0 : index
    %222 = vector.load %arg2[%c29, %c0_113] : memref<34x128xf32, #tpu.memory_space<vmem>>, vector<1x32xf32>
    %223 = vector.broadcast %222 : vector<1x32xf32> to vector<10x32xf32>
    %224 = arith.addf %221, %223 : vector<10x32xf32>
    %225 = arith.addf %147, %224 : vector<10x32xf32>
    %c27 = arith.constant 27 : index
    %c0_114 = arith.constant 0 : index
    %226 = vector.load %arg2[%c27, %c0_114] : memref<34x128xf32, #tpu.memory_space<vmem>>, vector<1x32xf32>
    %c28 = arith.constant 28 : index
    %c0_115 = arith.constant 0 : index
    %227 = vector.load %arg2[%c28, %c0_115] : memref<34x128xf32, #tpu.memory_space<vmem>>, vector<1x32xf32>
    %cst_116 = arith.constant dense<0.000000e+00> : vector<10xf32>
    %228 = vector.multi_reduction <add>, %225, %cst_116 [1] : vector<10x32xf32> to vector<10xf32>
    %229 = vector.shape_cast %228 : vector<10xf32> to vector<10x1xf32>
    %cst_117 = arith.constant 3.200000e+01 : f32
    %230 = vector.broadcast %cst_117 : f32 to vector<10x1xf32>
    %231 = arith.divf %229, %230 : vector<10x1xf32>
    %232 = vector.broadcast %231 : vector<10x1xf32> to vector<10x32xf32>
    %233 = arith.subf %225, %232 : vector<10x32xf32>
    %234 = arith.mulf %233, %233 : vector<10x32xf32>
    %cst_118 = arith.constant dense<0.000000e+00> : vector<10xf32>
    %235 = vector.multi_reduction <add>, %234, %cst_118 [1] : vector<10x32xf32> to vector<10xf32>
    %236 = vector.shape_cast %235 : vector<10xf32> to vector<10x1xf32>
    %cst_119 = arith.constant 3.200000e+01 : f32
    %237 = vector.broadcast %cst_119 : f32 to vector<10x1xf32>
    %238 = arith.divf %236, %237 : vector<10x1xf32>
    %cst_120 = arith.constant 9.99999974E-6 : f32
    %239 = vector.broadcast %cst_120 : f32 to vector<10x1xf32>
    %240 = arith.addf %238, %239 : vector<10x1xf32>
    %241 = math.rsqrt %240 : vector<10x1xf32>
    %242 = vector.broadcast %241 : vector<10x1xf32> to vector<10x32xf32>
    %243 = arith.mulf %233, %242 : vector<10x32xf32>
    %244 = vector.broadcast %226 : vector<1x32xf32> to vector<10x32xf32>
    %245 = arith.mulf %243, %244 : vector<10x32xf32>
    %246 = vector.broadcast %227 : vector<1x32xf32> to vector<10x32xf32>
    %247 = arith.addf %245, %246 : vector<10x32xf32>
    %c1_121 = arith.constant 1 : index
    %c0_122 = arith.constant 0 : index
    %c0_123 = arith.constant 0 : index
    %248 = vector.load %arg5[%c1_121, %c0_122, %c0_123] : memref<2x32x128xf32, #tpu.memory_space<vmem>>, vector<1x32x128xf32>
    %249 = vector.shape_cast %248 : vector<1x32x128xf32> to vector<32x128xf32>
    %cst_124 = arith.constant dense<0.000000e+00> : vector<10x128xf32>
    %250 = tpu.matmul %247, %249, %cst_124 {dimension_numbers = #tpu.dot_dimension_numbers<[1], [0], [0], [1], [0, 0, 1, 1], [], []>} : vector<10x32xf32>, vector<32x128xf32>, vector<10x128xf32> -> vector<10x128xf32>
    %c30 = arith.constant 30 : index
    %c0_125 = arith.constant 0 : index
    %251 = vector.load %arg2[%c30, %c0_125] : memref<34x128xf32, #tpu.memory_space<vmem>>, vector<1x128xf32>
    %252 = vector.broadcast %251 : vector<1x128xf32> to vector<10x128xf32>
    %253 = arith.addf %250, %252 : vector<10x128xf32>
    %cst_126 = arith.constant 1.702000e+00 : f32
    %254 = vector.broadcast %cst_126 : f32 to vector<10x128xf32>
    %255 = arith.mulf %254, %253 : vector<10x128xf32>
    %256 = arith.negf %255 : vector<10x128xf32>
    %257 = math.exp %256 : vector<10x128xf32>
    %cst_127 = arith.constant 1.000000e+00 : f32
    %258 = vector.broadcast %cst_127 : f32 to vector<10x128xf32>
    %259 = arith.addf %258, %257 : vector<10x128xf32>
    %260 = arith.divf %258, %259 : vector<10x128xf32>
    %261 = arith.mulf %253, %260 : vector<10x128xf32>
    %c1_128 = arith.constant 1 : index
    %c0_129 = arith.constant 0 : index
    %c0_130 = arith.constant 0 : index
    %262 = vector.load %arg6[%c1_128, %c0_129, %c0_130] : memref<2x128x32xf32, #tpu.memory_space<vmem>>, vector<1x128x32xf32>
    %263 = vector.shape_cast %262 : vector<1x128x32xf32> to vector<128x32xf32>
    %cst_131 = arith.constant dense<0.000000e+00> : vector<10x32xf32>
    %264 = tpu.matmul %261, %263, %cst_131 {dimension_numbers = #tpu.dot_dimension_numbers<[1], [0], [0], [1], [0, 0, 1, 1], [], []>} : vector<10x128xf32>, vector<128x32xf32>, vector<10x32xf32> -> vector<10x32xf32>
    %c31 = arith.constant 31 : index
    %c0_132 = arith.constant 0 : index
    %265 = vector.load %arg2[%c31, %c0_132] : memref<34x128xf32, #tpu.memory_space<vmem>>, vector<1x32xf32>
    %266 = vector.broadcast %265 : vector<1x32xf32> to vector<10x32xf32>
    %267 = arith.addf %264, %266 : vector<10x32xf32>
    %268 = arith.addf %225, %267 : vector<10x32xf32>
    %c0_133 = arith.constant 0 : index
    %c0_134 = arith.constant 0 : index
    %269 = vector.load %arg7[%c0_133, %c0_134] : memref<32x128xf32, #tpu.memory_space<vmem>>, vector<32x128xf32>
    %cst_135 = arith.constant dense<0.000000e+00> : vector<10x128xf32>
    %270 = tpu.matmul %268, %269, %cst_135 {dimension_numbers = #tpu.dot_dimension_numbers<[1], [0], [0], [1], [0, 0, 1, 1], [], []>} : vector<10x32xf32>, vector<32x128xf32>, vector<10x128xf32> -> vector<10x128xf32>
    %cst_136 = arith.constant dense<0.000000e+00> : vector<2x32xf32>
    %271 = tpu.matmul %1, %268, %cst_136 {dimension_numbers = #tpu.dot_dimension_numbers<[1], [0], [0], [1], [0, 0, 1, 1], [], []>} : vector<2x10xf32>, vector<10x32xf32>, vector<2x32xf32> -> vector<2x32xf32>
    %c14 = arith.constant 14 : index
    %c0_137 = arith.constant 0 : index
    %272 = vector.load %arg2[%c14, %c0_137] : memref<34x128xf32, #tpu.memory_space<vmem>>, vector<1x32xf32>
    %c15 = arith.constant 15 : index
    %c0_138 = arith.constant 0 : index
    %273 = vector.load %arg2[%c15, %c0_138] : memref<34x128xf32, #tpu.memory_space<vmem>>, vector<1x32xf32>
    %cst_139 = arith.constant dense<0.000000e+00> : vector<2xf32>
    %274 = vector.multi_reduction <add>, %271, %cst_139 [1] : vector<2x32xf32> to vector<2xf32>
    %275 = vector.shape_cast %274 : vector<2xf32> to vector<2x1xf32>
    %cst_140 = arith.constant 3.200000e+01 : f32
    %276 = vector.broadcast %cst_140 : f32 to vector<2x1xf32>
    %277 = arith.divf %275, %276 : vector<2x1xf32>
    %278 = vector.broadcast %277 : vector<2x1xf32> to vector<2x32xf32>
    %279 = arith.subf %271, %278 : vector<2x32xf32>
    %280 = arith.mulf %279, %279 : vector<2x32xf32>
    %cst_141 = arith.constant dense<0.000000e+00> : vector<2xf32>
    %281 = vector.multi_reduction <add>, %280, %cst_141 [1] : vector<2x32xf32> to vector<2xf32>
    %282 = vector.shape_cast %281 : vector<2xf32> to vector<2x1xf32>
    %cst_142 = arith.constant 3.200000e+01 : f32
    %283 = vector.broadcast %cst_142 : f32 to vector<2x1xf32>
    %284 = arith.divf %282, %283 : vector<2x1xf32>
    %cst_143 = arith.constant 9.99999974E-6 : f32
    %285 = vector.broadcast %cst_143 : f32 to vector<2x1xf32>
    %286 = arith.addf %284, %285 : vector<2x1xf32>
    %287 = math.rsqrt %286 : vector<2x1xf32>
    %288 = vector.broadcast %287 : vector<2x1xf32> to vector<2x32xf32>
    %289 = arith.mulf %279, %288 : vector<2x32xf32>
    %290 = vector.broadcast %272 : vector<1x32xf32> to vector<2x32xf32>
    %291 = arith.mulf %289, %290 : vector<2x32xf32>
    %292 = vector.broadcast %273 : vector<1x32xf32> to vector<2x32xf32>
    %293 = arith.addf %291, %292 : vector<2x32xf32>
    %cst_144 = arith.constant dense<0.000000e+00> : vector<2x128xf32>
    %294 = tpu.matmul %293, %269, %cst_144 {dimension_numbers = #tpu.dot_dimension_numbers<[1], [0], [0], [1], [0, 0, 1, 1], [], []>} : vector<2x32xf32>, vector<32x128xf32>, vector<2x128xf32> -> vector<2x128xf32>
    %295 = arith.mulf %294, %294 : vector<2x128xf32>
    %cst_145 = arith.constant dense<0.000000e+00> : vector<2xf32>
    %296 = vector.multi_reduction <add>, %295, %cst_145 [1] : vector<2x128xf32> to vector<2xf32>
    %297 = vector.shape_cast %296 : vector<2xf32> to vector<2x1xf32>
    %cst_146 = arith.constant 9.99999996E-13 : f32
    %298 = vector.broadcast %cst_146 : f32 to vector<2x1xf32>
    %299 = arith.addf %297, %298 : vector<2x1xf32>
    %300 = math.sqrt %299 : vector<2x1xf32>
    %301 = vector.broadcast %300 : vector<2x1xf32> to vector<2x128xf32>
    %302 = arith.divf %294, %301 : vector<2x128xf32>
    %303 = tpu.concatenate %270, %302 in 0 : vector<10x128xf32>, vector<2x128xf32> -> vector<12x128xf32>
    %c0_147 = arith.constant 0 : index
    %c0_148 = arith.constant 0 : index
    %304 = vector.load %arg8[%c0_147, %c0_148] : memref<12x128xf32, #tpu.memory_space<vmem>>, vector<12x128xf32>
    tpu.vector_store %arg8[%c0_147, %c0_148], %303 {strides = array<i32>} : memref<12x128xf32, #tpu.memory_space<vmem>>, vector<12x128xf32>,
    return
  }
}

</mosaic_0001>

<bundles_post_ra>
// kernel: clip_image_encoder_forward.1
= control target key start
LH: loop header
LB: loop body
LE: loop exit
PB: predicated region body
PF: predicated region fallthrough
CT: control target
= control target key end

     0   :  { %v3762_v0 = vmov 0.0   ;;  %vm61_vm0 = vcmask 572416   ;;  %vm68_vm1 = vcmask 1045504   ;;  %vm149_vm2 = vcmask 261120   ;;  %s4550_s1 = inlined_call_operand.vmem [shape: f32[198,32], index: 1, kind: input, shape index: {}]   ;;  %s4551_s0 = inlined_call_operand.vmem [shape: f32[10,198], index: 0, kind: input, shape index: {}]   ;;  %s4552_s2 = inlined_call_operand.vmem [shape: f32[34,128], index: 2, kind: input, shape index: {}]   ;;  %s4553_s3 = inlined_call_operand.vmem [shape: f32[12,32,16], index: 3, kind: input, shape index: {}]   ;;  %s4554_s4 = inlined_call_operand.vmem [shape: f32[2,32,32], index: 4, kind: input, shape index: {}]   ;;  %s4555_s5 = inlined_call_operand.vmem [shape: f32[2,32,128], index: 5, kind: input, shape index: {}]   ;;  %s4556_s6 = inlined_call_operand.vmem [shape: f32[2,128,32], index: 6, kind: input, shape index: {}]   ;;  %s4557_s7 = inlined_call_operand.vmem [shape: f32[32,128], index: 7, kind: input, shape index: {}]   ;;  %s4558_s8 = inlined_call_operand.vmem [shape: f32[12,128], index: 8, kind: output, shape index: {}]  }
   0x1   :  { %72 = vmatprep.subr.mxu0 %v3762_v0  ;;  %v51_v1 = vld [vmem:[%s4550_s1 + $0x78] sm:$0xff]  ;;  %v50_v2 = vld [vmem:[%s4550_s1 + $0x70] sm:$0xff]  ;;  %v49_v3 = vld [vmem:[%s4550_s1 + $0x68] sm:$0xff]  ;;  %vm153_vm3 = vcmask 254976   ;;  %vm594_vm4 = vcmask 1041408   ;;  %vm480_vm5 = vcmask 130048  }
   0x2   :  { %73 = vmatpush1.msra.mxu0 %v51_v1  ;;  %v48_v4 = vld [vmem:[%s4550_s1 + $0x60] sm:$0xff]  ;;  %v47_v5 = vld [vmem:[%s4550_s1 + $0x58] sm:$0xff]  ;;  %v46_v6 = vld [vmem:[%s4550_s1 + $0x50] sm:$0xff]  ;;  %vm572_vm6 = vcmask 74752   ;;  %vm568_vm7 = vcmask 80896   ;;  %vm3764_vm8 = vmmov 0  }
   0x3   :  { %74 = vmatprep.subr.mxu0 %v3762_v0  ;;  %v33_v7 = vld [vmem:[%s4551_s0 + $0x8] sm:$0xff]  ;;  %v44_v9 = vld [vmem:[%s4550_s1 + $0x40] sm:$0xff]  ;;  %v43_v10 = vld [vmem:[%s4550_s1 + $0x38] sm:$0xff] }
   0x4   :  { %75 = vmatpush1.msra.mxu0 %v50_v2  ;;  %3015 = vmatprep.mubr.msk.f32.mxu0 %vm61_vm0, %v33_v7  ;;  %v45_v8 = vld [vmem:[%s4550_s1 + $0x48] sm:$0xff]  ;;  %v42_v11 = vld [vmem:[%s4550_s1 + $0x30] sm:$0xff]  ;;  %v40_v13 = vld [vmem:[%s4550_s1 + $0x20] sm:$0xff] }
   0x5   :  { %76 = vmatprep.subr.mxu0 %v3762_v0  ;;  %v41_v12 = vld [vmem:[%s4550_s1 + $0x28] sm:$0xff]  ;;  %v39_v14 = vld [vmem:[%s4550_s1 + $0x18] sm:$0xff]  ;;  %v38_v15 = vld [vmem:[%s4550_s1 + $0x10] sm:$0xff] }
   0x6   :  { %77 = vmatpush1.msra.mxu0 %v49_v3  ;;  %v37_v16 = vld [vmem:[%s4550_s1 + $0x8] sm:$0xff]  ;;  %v36_v17 = vld [vmem:[%s4550_s1] sm:$0xff]  ;;  %v59_v19 = vld [vmem:[%s4550_s1 + $0xb8] sm:$0xff] }
   0x7   :  { %78 = vmatprep.subr.mxu0 %v3762_v0  ;;  %v60_v18 = vld [vmem:[%s4550_s1 + $0xc0] sm:$0x3f]  ;;  %v58_v20 = vld [vmem:[%s4550_s1 + $0xb0] sm:$0xff]  ;;  %v57_v21 = vld [vmem:[%s4550_s1 + $0xa8] sm:$0xff] }
   0x8   :  { %79 = vmatpush1.msra.mxu0 %v48_v4  ;;  %v56_v22 = vld [vmem:[%s4550_s1 + $0xa0] sm:$0xff]  ;;  %v55_v23 = vld [vmem:[%s4550_s1 + $0x98] sm:$0xff]  ;;  %v54_v24 = vld [vmem:[%s4550_s1 + $0x90] sm:$0xff] }
   0x9   :  { %80 = vmatprep.subr.mxu0 %v3762_v0  ;;  %v53_v25 = vld [vmem:[%s4550_s1 + $0x88] sm:$0xff]  ;;  %v52_v26 = vld [vmem:[%s4550_s1 + $0x80] sm:$0xff]  ;;  %v35_v28 = vld [vmem:[%s4551_s0 + $0x18] sm:$0x3] }
   0xa   :  { %81 = vmatpush1.msra.mxu0 %v47_v5  ;;  %v32_v27 = vld [vmem:[%s4551_s0] sm:$0xff]  ;;  %v34_v29 = vld [vmem:[%s4551_s0 + $0x10] sm:$0x3]  ;;  %v3017_v53 = vld [vmem:[%s4552_s2 + $0xc] ss:$0 sm:$0xff]  ;;  %s3763_s0 = smov 16  }
   0xb   :  { %82 = vmatprep.subr.mxu0 %v3762_v0  ;;  %v3018_v55 = vld [vmem:[%s4552_s2 + $0xd] ss:$0 sm:$0xff] }
   0xc   :  { %83 = vmatpush1.msra.mxu0 %v46_v6 }
   0xd   :  { %84 = vmatprep.subr.mxu0 %v3762_v0 }
   0xe   :  { %85 = vmatpush1.msra.mxu0 %v45_v8 }
   0xf   :  { %86 = vmatprep.subr.mxu0 %v3762_v0 }
  0x10   :  { %87 = vmatpush1.msra.mxu0 %v44_v9 }
  0x11   :  { %88 = vmatprep.subr.mxu0 %v3762_v0 }
  0x12   :  { %89 = vmatpush1.msra.mxu0 %v43_v10 }
  0x13   :  { %90 = vmatprep.subr.mxu0 %v3762_v0 }
  0x14   :  { %91 = vmatpush1.msra.mxu0 %v42_v11  ;;  %v233_v11 = vld [vmem:[%s4553_s3 + $0x18] sm:$0xff] }
  0x15   :  { %92 = vmatprep.subr.mxu0 %v3762_v0  ;;  %3354 = vmatprep.subr.mxu1 %v233_v11 }
  0x16   :  { %93 = vmatpush1.msra.mxu0 %v41_v12  ;;  %v3054_v12 = vld [vmem:[%s4553_s3 + $0xb8] sm:$0xff]  ;;  %3355 = vmatpush3.msra.mxu1 %v233_v11  ;;  %v3044_v11 = vld [vmem:[%s4553_s3 + $0x28] sm:$0xff] }
  0x17   :  { %94 = vmatprep.subr.mxu0 %v3762_v0 }
  0x18   :  { %95 = vmatpush1.msra.mxu0 %v40_v13  ;;  %v232_v13 = vld [vmem:[%s4553_s3 + $0x10] sm:$0xff] }
  0x19   :  { %96 = vmatprep.subr.mxu0 %v3762_v0  ;;  %3356 = vmatprep.subr.mxu1 %v232_v13 }
  0x1a   :  { %97 = vmatpush1.msra.mxu0 %v39_v14  ;;  %v3053_v14 = vld [vmem:[%s4553_s3 + $0xb0] sm:$0xff]  ;;  %3357 = vmatpush3.msra.mxu1 %v232_v13  ;;  %v3050_v13 = vld [vmem:[%s4553_s3 + $0x78] sm:$0xff] }
  0x1b   :  { %98 = vmatprep.subr.mxu0 %v3762_v0 }
  0x1c   :  { %99 = vmatpush1.msra.mxu0 %v38_v15  ;;  %v231_v15 = vld [vmem:[%s4553_s3 + $0x8] sm:$0xff] }
  0x1d   :  { %100 = vmatprep.subr.mxu0 %v3762_v0  ;;  %3358 = vmatprep.subr.mxu1 %v231_v15 }
  0x1e   :  { %101 = vmatpush1.msra.mxu0 %v37_v16  ;;  %v3052_v16 = vld [vmem:[%s4553_s3 + $0xa8] sm:$0xff]  ;;  %3359 = vmatpush3.msra.mxu1 %v231_v15 }
  0x1f   :  { %102 = vmatprep.subr.mxu0 %v3762_v0  ;;  %v3048_v15 = vld [vmem:[%s4553_s3 + $0x68] sm:$0xff] }
  0x20   :  { %103 = vmatpush1.msra.mxu0 %v36_v17  ;;  %v230_v17 = vld [vmem:[%s4553_s3] sm:$0xff] }
  0x21   :  { %118 = vmatprep.subr.mxu0 %v3762_v0  ;;  %3360 = vmatprep.subr.mxu1 %v230_v17 }
  0x22   :  { %3014 = vmatpush2.msk.msra.mxu0 %vm68_vm1, %v60_v18  ;;  %v3051_v18 = vld [vmem:[%s4553_s3 + $0xa0] sm:$0xff]  ;;  %3361 = vmatpush3.msra.mxu1 %v230_v17 }
  0x23   :  { %120 = vmatprep.subr.mxu0 %v3762_v0 }
  0x24   :  { %121 = vmatpush2.msra.mxu0 %v59_v19  ;;  %v3024_v19 = vld [vmem:[%s4553_s3 + $0x58] sm:$0xff] }
  0x25   :  { %122 = vmatprep.subr.mxu0 %v3762_v0  ;;  %3365 = vmatprep.subr.mxu1 %v3024_v19 }
  0x26   :  { %123 = vmatpush2.msra.mxu0 %v58_v20 }
  0x27   :  { %124 = vmatprep.subr.mxu0 %v3762_v0 }
  0x28   :  { %125 = vmatpush2.msra.mxu0 %v57_v21 }
  0x29   :  { %126 = vmatprep.subr.mxu0 %v3762_v0 }
  0x2a   :  { %127 = vmatpush2.msra.mxu0 %v56_v22 }
  0x2b   :  { %128 = vmatprep.subr.mxu0 %v3762_v0 }
  0x2c   :  { %129 = vmatpush2.msra.mxu0 %v55_v23 }
  0x2d   :  { %130 = vmatprep.subr.mxu0 %v3762_v0 }
  0x2e   :  { %131 = vmatpush2.msra.mxu0 %v54_v24 }
  0x2f   :  { %132 = vmatprep.subr.mxu0 %v3762_v0 }
  0x30   :  { %133 = vmatpush2.msra.mxu0 %v53_v25 }
  0x31   :  { %134 = vmatprep.subr.mxu0 %v3762_v0 }
  0x32   :  { %135 = vmatpush2.msra.mxu0 %v52_v26 }
  0x33   :  { %137 = vmatmul.mubr.f32.vlgmr.msra.gmra.mxu0 %v32_v27  ;;  %3423 = vmatprep.subr.mxu0 %v3054_v12  ;;  %v3019_v27 = vld [vmem:[%s4552_s2 + $0x10] ss:$0 sm:$0xff] }
  0x34   :  { %3016 = vmatprep.mubr.msk.f32.mxu0 %vm61_vm0, %v35_v28  ;;  %3424 = vmatpush3.msra.mxu0 %v3054_v12  ;;  %v3043_v12 = vld [vmem:[%s4553_s3 + $0x20] sm:$0xff] }
  0x35   :  { %3425 = vmatprep.subr.mxu0 %v3053_v14 }
  0x36   :  { %3426 = vmatpush3.msra.mxu0 %v3053_v14  ;;  %v3049_v14 = vld [vmem:[%s4553_s3 + $0x70] sm:$0xff] }
  0x37   :  { %142 = vmatmul.mubr.f32.gmra.mxu0 %v34_v29  ;;  %3427 = vmatprep.subr.mxu0 %v3052_v16  ;;  %v3020_v29 = vld [vmem:[%s4552_s2 + $0x11] ss:$0 sm:$0xff] }
  0x38   :  { %3428 = vmatpush3.msra.mxu0 %v3052_v16  ;;  %v3047_v16 = vld [vmem:[%s4553_s3 + $0x60] sm:$0xff] }
  0x39   :  { %3429 = vmatprep.subr.mxu0 %v3051_v18 }
  0x3a   :  { %3430 = vmatpush3.msra.mxu0 %v3051_v18 }
  0xf3   :  { %v138_v30 = vpop.f32.mrf.mxu0 }
  0xf4   :  { %v150_v31 = vsel %vm149_vm2, %v138_v30, 0.0 }
  0xf5   :  { %151 = vadd.xlane.f32.xlu0 %v150_v31  ;;  %v140_v32 = vpop.f32.mrf.mxu0 }
  0xf7   :  { %v143_v33 = vpop.f32.mrf.mxu0 }
  0xf8   :  { %v154_v34 = vsel %vm153_vm3, %v143_v33, 0.0 }
  0xf9   :  { %155 = vadd.xlane.f32.xlu0 %v154_v34  ;;  %v145_v35 = vpop.f32.mrf.mxu0 }
 0x17e   :  { %v152_v36 = vpop.xlane.xlu0 %151 }
 0x17f   :  { %v158_v37 = vmul.f32 0.03125, %v152_v36  ;;  %v3023_v36 = vld [vmem:[%s4553_s3 + $0x50] sm:$0xff] }
 0x181   :  { %v160_v38 = vsub.f32 %v138_v30, %v158_v37  ;;  %v3022_v37 = vld [vmem:[%s4553_s3 + $0x48] sm:$0xff] }
 0x182   :  { %v156_v39 = vpop.xlane.xlu0 %155 }
 0x183   :  { %v159_v40 = vmul.f32 0.03125, %v156_v39  ;;  %v162_v41 = vmul.f32 %v160_v38, %v160_v38  ;;  %v3028_v39 = vld [vmem:[%s4553_s3 + $0x98] sm:$0xff] }
 0x185   :  { %v161_v42 = vsub.f32 %v143_v33, %v159_v40  ;;  %v164_v43 = vsel %vm149_vm2, %v162_v41, 0.0  ;;  %v3027_v40 = vld [vmem:[%s4553_s3 + $0x90] sm:$0xff]  ;;  %v3026_v41 = vld [vmem:[%s4553_s3 + $0x88] sm:$0xff] }
 0x186   :  { %165 = vadd.xlane.f32.xlu1 %v164_v43 }
 0x187   :  { %v163_v44 = vmul.f32 %v161_v42, %v161_v42 }
 0x189   :  { %v167_v45 = vsel %vm153_vm3, %v163_v44, 0.0 }
 0x18a   :  { %168 = vadd.xlane.f32.xlu1 %v167_v45  ;;  %v3029_v45 = vld [vmem:[%s4552_s2 + $0x17] ss:$0 sm:$0xff] }
 0x20f   :  { %v166_v46 = vpop.xlane.xlu1 %165 }
 0x210   :  { %v170_v47 = vmul.f32 0.03125, %v166_v46 }
 0x212   :  { %v172_v48 = vadd.f32 1e-05, %v170_v47 }
 0x213   :  { %v169_v49 = vpop.xlane.xlu1 %168 }
 0x214   :  { %3688 = vrsqrt.f32 %v172_v48  ;;  %v171_v50 = vmul.f32 0.03125, %v169_v49 }
 0x216   :  { %v173_v51 = vadd.f32 1e-05, %v171_v50 }
 0x218   :  { %3690 = vrsqrt.f32 %v173_v51 }
 0x221   :  { %v3689_v52 = vpop.eup %3688 }
 0x222   :  { %v176_v54 = vmul.f32 %v3689_v52, %v160_v38  ;;  %v3021_v38 = vld [vmem:[%s4553_s3 + $0x40] sm:$0xff] }
 0x224   :  { %v182_v56 = vmul.f32 %v3017_v53, %v176_v54  ;;  %v4036_v54 = vld [vmem:[%s4552_s2 + $0x8] sm:$0x3] }
 0x225   :  { %v3691_v57 = vpop.eup %3690 }
 0x226   :  { %v3934_v58 = vadd.f32 %v3018_v55, %v182_v56  ;;  %v177_v59 = vmul.f32 %v3691_v57, %v161_v42  ;;  %v3025_v42 = vld [vmem:[%s4553_s3 + $0x80] sm:$0xff] }
 0x227   :  { %v4041_v56 = vld [vmem:[%s4552_s2] sm:$0xff] }
 0x228   :  { %v192_v60 = vsel %vm149_vm2, %v3934_v58, 0.0  ;;  %v183_v61 = vmul.f32 %v3017_v53, %v177_v59 }
 0x229   :  { %193 = vadd.xlane.f32.xlu0 %v192_v60 }
 0x22a   :  { %v3938_v62 = vadd.f32 %v3018_v55, %v183_v61 }
 0x22c   :  { %v195_v63 = vsel %vm153_vm3, %v3938_v62, 0.0 }
 0x22d   :  { %196 = vadd.xlane.f32.xlu1 %v195_v63 }
 0x2b2   :  { %v194_v1 = vpop.xlane.xlu0 %193 }
 0x2b3   :  { %v198_v2 = vmul.f32 0.03125, %v194_v1  ;;  %v3046_v1 = vld [vmem:[%s4553_s3 + $0x38] sm:$0xff] }
 0x2b5   :  { %v200_v3 = vsub.f32 %v3934_v58, %v198_v2 }
 0x2b6   :  { %v197_v4 = vpop.xlane.xlu1 %196 }
 0x2b7   :  { %v199_v5 = vmul.f32 0.03125, %v197_v4  ;;  %v202_v6 = vmul.f32 %v200_v3, %v200_v3 }
 0x2b9   :  { %v201_v7 = vsub.f32 %v3938_v62, %v199_v5  ;;  %v204_v8 = vsel %vm149_vm2, %v202_v6, 0.0 }
 0x2ba   :  { %205 = vadd.xlane.f32.xlu0 %v204_v8 }
 0x2bb   :  { %v203_v9 = vmul.f32 %v201_v7, %v201_v7 }
 0x2bd   :  { %v207_v10 = vsel %vm153_vm3, %v203_v9, 0.0 }
 0x2be   :  { %208 = vadd.xlane.f32.xlu1 %v207_v10  ;;  %v3045_v10 = vld [vmem:[%s4553_s3 + $0x30] sm:$0xff] }
 0x343   :  { %v206_v20 = vpop.xlane.xlu0 %205 }
 0x344   :  { %v210_v21 = vmul.f32 0.03125, %v206_v20  ;;  %v3055_v20 = vld [vmem:[%s4552_s2 + $0x18] ss:$0 sm:$0xff] }
 0x346   :  { %v212_v22 = vadd.f32 1e-05, %v210_v21 }
 0x347   :  { %v209_v23 = vpop.xlane.xlu1 %208 }
 0x348   :  { %3692 = vrsqrt.f32 %v212_v22  ;;  %v211_v24 = vmul.f32 0.03125, %v209_v23 }
 0x34a   :  { %v213_v25 = vadd.f32 1e-05, %v211_v24 }
 0x34c   :  { %3694 = vrsqrt.f32 %v213_v25 }
 0x355   :  { %v3693_v26 = vpop.eup %3692 }
 0x356   :  { %v216_v28 = vmul.f32 %v3693_v26, %v200_v3 }
 0x358   :  { %v222_v30 = vmul.f32 %v3019_v27, %v216_v28 }
 0x359   :  { %v3695_v31 = vpop.eup %3694 }
 0x35a   :  { %v217_v32 = vmul.f32 %v3695_v31, %v201_v7  ;;  %v3979_v33 = vadd.f32 %v3020_v29, %v222_v30 }
 0x35c   :  { %v223_v34 = vmul.f32 %v3019_v27, %v217_v32  ;;  %3362 = vmatprep.mubr.msk.f32.mxu1 %vm149_vm2, %v3979_v33  ;;  %3431 = vmatprep.mubr.msk.f32.mxu0 %vm149_vm2, %v3979_v33 }
 0x35e   :  { %v3985_v35 = vadd.f32 %v3020_v29, %v223_v34 }
 0x360   :  { %3363 = vmatmul.mubr.msk.f32.vlgmr.msra.gmra.mxu1 %vm149_vm2, %v3985_v35  ;;  %3432 = vmatmul.mubr.msk.f32.vlgmr.msra.gmra.mxu0 %vm149_vm2, %v3985_v35 }
 0x361   :  { %3366 = vmatpush3.msra.mxu1 %v3024_v19  ;;  %3373 = vmatprep.mubr.msk.f32.mxu1 %vm149_vm2, %v3979_v33 }
 0x362   :  { %3367 = vmatprep.subr.mxu1 %v3023_v36 }
 0x363   :  { %3368 = vmatpush3.msra.mxu1 %v3023_v36 }
 0x364   :  { %3369 = vmatprep.subr.mxu1 %v3022_v37 }
 0x365   :  { %3370 = vmatpush3.msra.mxu1 %v3022_v37 }
 0x366   :  { %3371 = vmatprep.subr.mxu1 %v3021_v38 }
 0x367   :  { %3372 = vmatpush3.msra.mxu1 %v3021_v38 }
 0x368   :  { %3374 = vmatmul.mubr.msk.f32.vlgmr.msra.gmra.mxu1 %vm149_vm2, %v3985_v35  ;;  %3376 = vmatprep.subr.mxu1 %v3028_v39 }
 0x369   :  { %3377 = vmatpush3.msra.mxu1 %v3028_v39  ;;  %3384 = vmatprep.mubr.msk.f32.mxu1 %vm149_vm2, %v3979_v33 }
 0x36a   :  { %3378 = vmatprep.subr.mxu1 %v3027_v40 }
 0x36b   :  { %3379 = vmatpush3.msra.mxu1 %v3027_v40 }
 0x36c   :  { %3380 = vmatprep.subr.mxu1 %v3026_v41 }
 0x36d   :  { %3381 = vmatpush3.msra.mxu1 %v3026_v41 }
 0x36e   :  { %3382 = vmatprep.subr.mxu1 %v3025_v42 }
 0x36f   :  { %3383 = vmatpush3.msra.mxu1 %v3025_v42 }
 0x370   :  { %3385 = vmatmul.mubr.msk.f32.vlgmr.msra.gmra.mxu1 %vm149_vm2, %v3985_v35 }
 0x420   :  { %v3364_v43 = vpop.f32.mrf.mxu1  ;;  %v3433_v44 = vpop.f32.mrf.mxu0 }
 0x421   :  { %3441 = vmatprep.subr.msk.mxu0 %vm594_vm4, %v3433_v44  ;;  %v327_v51 = vadd.f32 %v3364_v43, %v3029_v45 }
 0x422   :  { %v321_v46 = vpop.f32.mrf.mxu1  ;;  %v913_v47 = vpop.f32.mrf.mxu0  ;;  %3442 = vmatpush3.msk.msra.mxu0 %vm594_vm4, %v3433_v44  ;;  %v1128_v44 = vld [vmem:[%s4554_s4 + $0x18] sm:$0xff] }
 0x423   :  { %v322_v48 = vadd.f32 %v3029_v45, %v321_v46  ;;  %3443 = vmatprep.subr.mxu0 %v913_v47  ;;  %v1127_v45 = vld [vmem:[%s4554_s4 + $0x10] sm:$0xff] }
 0x424   :  { %3444 = vmatpush3.msra.mxu0 %v913_v47 }
 0x425   :  { %3391 = vmatprep.mubr.msk.f32.mxu1 %vm480_vm5, %v322_v48  ;;  %v1126_v48 = vld [vmem:[%s4554_s4 + $0x8] sm:$0xff] }
 0x428   :  { %v3375_v49 = vpop.f32.mrf.mxu1 }
 0x429   :  { %3387 = vmatprep.subr.msk.mxu1 %vm480_vm5, %v3375_v49 }
 0x42a   :  { %v396_v50 = vpop.f32.mrf.mxu1  ;;  %3388 = vmatpush3.xpose.msk.msra.mxu1 %vm480_vm5, %v3375_v49  ;;  %v1125_v49 = vld [vmem:[%s4554_s4] sm:$0xff] }
 0x42b   :  { %3389 = vmatprep.subr.msk.mxu1 %vm480_vm5, %v396_v50 }
 0x42e   :  { %3390 = vmatpush3.xpose.msk.msra.mxu1 %vm480_vm5, %v396_v50 }
 0x430   :  { %v3386_v52 = vpop.f32.mrf.mxu1 }
 0x431   :  { %3392 = vmatmul.mubr.msk.f32.vlgmr.msra.gmra.mxu1 %vm480_vm5, %v327_v51  ;;  %3394 = vmatprep.subr.msk.mxu1 %vm594_vm4, %v3386_v52 }
 0x432   :  { %v471_v53 = vpop.f32.mrf.mxu1  ;;  %3395 = vmatpush3.msk.msra.mxu1 %vm594_vm4, %v3386_v52 }
 0x433   :  { %3396 = vmatprep.subr.mxu1 %v471_v53 }
 0x434   :  { %3397 = vmatpush3.msra.mxu1 %v471_v53 }
 0x435   :  { %3401 = vmatprep.subr.mxu1 %v3046_v1 }
 0x4f1   :  { %v3393_v55 = vpop.f32.mrf.mxu1 }
 0x4f2   :  { %v565_v57 = vadd.f32 %v3393_v55, %v4036_v54 }
 0x4f3   :  { %v559_v59 = vpop.f32.mrf.mxu1 }
 0x4f4   :  { %v560_v60 = vadd.f32 %v559_v59, %v4041_v56  ;;  %v573_v61 = vsel %vm572_vm6, %v565_v57, -inf }
 0x4f5   :  { %574 = vmax.xlane.f32.xlu1 %v573_v61 }
 0x4f6   :  { %v569_v63 = vsel %vm568_vm7, %v560_v60, -inf }
 0x4f7   :  { %570 = vmax.xlane.f32.xlu0 %v569_v63 }
 0x57e   :  { %v575_v2 = vpop.xlane.xlu1 %574 }
 0x57f   :  { %v577_v3 = vsub.f32 %v565_v57, %v575_v2 }
 0x580   :  { %v571_v4 = vpop.xlane.xlu0 %570 }
 0x581   :  { %v576_v5 = vsub.f32 %v560_v60, %v571_v4  ;;  %v580_v6 = vmul.f32 1.442695, %v577_v3 }
 0x583   :  { %v578_v7 = vmul.f32 1.442695, %v576_v5 }
 0x585   :  { %3696 = vpow2.f32 %v578_v7  ;;  %v3069_v7 = vld [vmem:[%s4552_s2 + $0x14] ss:$0 sm:$0xff] }
 0x586   :  { %3698 = vpow2.f32 %v580_v6 }
 0x592   :  { %v4050_v8 = vpop.eup %3696 }
 0x593   :  { %v4052_v9 = vpop.eup %3698  ;;  %3398 = vmatprep.mubr.msk.f32.mxu1 %vm568_vm7, %v4050_v8  ;;  %v582_v43 = vsel %vm568_vm7, %v4050_v8, 0.0 }
 0x594   :  { %3399 = vmatmul.mubr.msk.f32.vlgmr.msra.gmra.mxu1 %vm568_vm7, %v4052_v9  ;;  %v585_v42 = vsel %vm572_vm6, %v4052_v9, 0.0 }
 0x595   :  { %3402 = vmatpush3.msra.mxu1 %v3046_v1  ;;  %3409 = vmatprep.mubr.msk.f32.mxu1 %vm149_vm2, %v3979_v33 }
 0x596   :  { %3403 = vmatprep.subr.mxu1 %v3045_v10 }
 0x597   :  { %3404 = vmatpush3.msra.mxu1 %v3045_v10 }
 0x598   :  { %3405 = vmatprep.subr.mxu1 %v3044_v11 }
 0x599   :  { %3406 = vmatpush3.msra.mxu1 %v3044_v11 }
 0x59a   :  { %3407 = vmatprep.subr.mxu1 %v3043_v12 }
 0x59b   :  { %3408 = vmatpush3.msra.mxu1 %v3043_v12 }
 0x59c   :  { %3410 = vmatmul.mubr.msk.f32.vlgmr.msra.gmra.mxu1 %vm149_vm2, %v3985_v35  ;;  %3412 = vmatprep.subr.mxu1 %v3050_v13 }
 0x59d   :  { %3413 = vmatpush3.msra.mxu1 %v3050_v13  ;;  %3420 = vmatprep.mubr.msk.f32.mxu1 %vm149_vm2, %v3979_v33 }
 0x59e   :  { %3414 = vmatprep.subr.mxu1 %v3049_v14 }
 0x59f   :  { %3415 = vmatpush3.msra.mxu1 %v3049_v14 }
 0x5a0   :  { %3416 = vmatprep.subr.mxu1 %v3048_v15 }
 0x5a1   :  { %3417 = vmatpush3.msra.mxu1 %v3048_v15 }
 0x5a2   :  { %3418 = vmatprep.subr.mxu1 %v3047_v16 }
 0x5a3   :  { %3419 = vmatpush3.msra.mxu1 %v3047_v16 }
 0x5a4   :  { %3421 = vmatmul.mubr.msk.f32.vlgmr.msra.gmra.mxu1 %vm149_vm2, %v3985_v35 }
 0x654   :  { %v4087_v17 = vpop.f32.mrf.mxu1 }
 0x656   :  { %v4089_v18 = vpop.f32.mrf.mxu1 }
 0x65c   :  { %v3411_v19 = vpop.f32.mrf.mxu1 }
 0x65d   :  { %v769_v25 = vadd.f32 %v3411_v19, %v3055_v20 }
 0x65e   :  { %v763_v21 = vpop.f32.mrf.mxu1 }
 0x65f   :  { %v764_v22 = vadd.f32 %v3055_v20, %v763_v21 }
 0x661   :  { %3438 = vmatprep.mubr.msk.f32.mxu1 %vm480_vm5, %v764_v22 }
 0x664   :  { %v3422_v23 = vpop.f32.mrf.mxu1 }
 0x665   :  { %3434 = vmatprep.subr.msk.mxu1 %vm480_vm5, %v3422_v23 }
 0x666   :  { %v838_v24 = vpop.f32.mrf.mxu1  ;;  %3435 = vmatpush3.xpose.msk.msra.mxu1 %vm480_vm5, %v3422_v23 }
 0x667   :  { %3436 = vmatprep.subr.msk.mxu1 %vm480_vm5, %v838_v24 }
 0x66a   :  { %3437 = vmatpush3.xpose.msk.msra.mxu1 %vm480_vm5, %v838_v24  ;;  %v1260_v24 = vld [vmem:[%s4555_s5 + $0x18] sm:$0xff] }
 0x66b   :  { %3448 = vmatprep.subr.mxu1 %v1128_v44  ;;  %3459 = vmatprep.subr.mxu0 %v1260_v24 }
 0x66d   :  { %3439 = vmatmul.mubr.msk.f32.vlgmr.msra.gmra.mxu1 %vm480_vm5, %v769_v25  ;;  %v1259_v25 = vld [vmem:[%s4555_s5 + $0x10] sm:$0xff] }
 0x66e   :  { %3449 = vmatpush3.msra.mxu1 %v1128_v44  ;;  %v1378_v44 = vld [vmem:[%s4556_s6 + $0x78] sm:$0xff] }
 0x66f   :  { %3450 = vmatprep.subr.mxu1 %v1127_v45 }
 0x670   :  { %3451 = vmatpush3.msra.mxu1 %v1127_v45  ;;  %v1377_v45 = vld [vmem:[%s4556_s6 + $0x70] sm:$0xff] }
 0x671   :  { %3452 = vmatprep.subr.mxu1 %v1126_v48 }
 0x672   :  { %3453 = vmatpush3.msra.mxu1 %v1126_v48  ;;  %v1374_v48 = vld [vmem:[%s4556_s6 + $0x58] sm:$0xff] }
 0x673   :  { %3454 = vmatprep.subr.mxu1 %v1125_v49 }
 0x674   :  { %3455 = vmatpush3.msra.mxu1 %v1125_v49  ;;  %v1373_v49 = vld [vmem:[%s4556_s6 + $0x50] sm:$0xff] }
 0x675   :  { %3470 = vmatprep.subr.mxu1 %v1378_v44 }
 0x72d   :  { %v3440_v26 = vpop.f32.mrf.mxu1 }
 0x72e   :  { %v1006_v27 = vadd.f32 %v3440_v26, %v4036_v54  ;;  %v1258_v26 = vld [vmem:[%s4555_s5 + $0x8] sm:$0xff] }
 0x72f   :  { %v1000_v28 = vpop.f32.mrf.mxu1 }
 0x730   :  { %v1001_v29 = vadd.f32 %v1000_v28, %v4041_v56  ;;  %v1012_v30 = vsel %vm572_vm6, %v1006_v27, -inf }
 0x731   :  { %1013 = vmax.xlane.f32.xlu1 %v1012_v30 }
 0x732   :  { %v1009_v31 = vsel %vm568_vm7, %v1001_v29, -inf }
 0x733   :  { %1010 = vmax.xlane.f32.xlu0 %v1009_v31 }
 0x7ba   :  { %v1014_v32 = vpop.xlane.xlu1 %1013 }
 0x7bb   :  { %v1016_v33 = vsub.f32 %v1006_v27, %v1014_v32  ;;  %v1257_v27 = vld [vmem:[%s4555_s5] sm:$0xff] }
 0x7bc   :  { %v1011_v34 = vpop.xlane.xlu0 %1010 }
 0x7bd   :  { %v1019_v35 = vmul.f32 1.442695, %v1016_v33  ;;  %v1015_v36 = vsub.f32 %v1001_v29, %v1011_v34 }
 0x7bf   :  { %3700 = vpow2.f32 %v1019_v35  ;;  %v1017_v37 = vmul.f32 1.442695, %v1015_v36  ;;  %v3072_v35 = vld [vmem:[%s4552_s2 + $0x12] ss:$0 sm:$0xff] }
 0x7c1   :  { %3702 = vpow2.f32 %v1017_v37 }
 0x7cc   :  { %v3701_v38 = vpop.eup %3700 }
 0x7cd   :  { %v1024_v39 = vsel %vm572_vm6, %v3701_v38, 0.0 }
 0x7ce   :  { %v3703_v40 = vpop.eup %3702  ;;  %1025 = vadd.xlane.f32.xlu1 %v1024_v39 }
 0x7cf   :  { %3445 = vmatprep.mubr.msk.f32.mxu0 %vm568_vm7, %v3703_v40  ;;  %v1021_v41 = vsel %vm568_vm7, %v3703_v40, 0.0  ;;  %v3073_v40 = vld [vmem:[%s4552_s2 + $0x13] ss:$0 sm:$0xff] }
 0x7d0   :  { %1022 = vadd.xlane.f32.xlu0 %v1021_v41  ;;  %3446 = vmatmul.mubr.msk.f32.vlgmr.msra.gmra.mxu0 %vm568_vm7, %v3701_v38 }
 0x7d1   :  { %3460 = vmatpush3.msra.mxu0 %v1260_v24 }
 0x7d2   :  { %586 = vadd.xlane.f32.xlu1 %v585_v42  ;;  %3461 = vmatprep.subr.mxu0 %v1259_v25 }
 0x7d3   :  { %3462 = vmatpush3.msra.mxu0 %v1259_v25 }
 0x7d4   :  { %583 = vadd.xlane.f32.xlu0 %v582_v43  ;;  %3463 = vmatprep.subr.mxu0 %v1258_v26 }
 0x7d5   :  { %3464 = vmatpush3.msra.mxu0 %v1258_v26 }
 0x7d6   :  { %3465 = vmatprep.subr.mxu0 %v1257_v27 }
 0x7d7   :  { %3466 = vmatpush3.msra.mxu0 %v1257_v27 }
 0x857   :  { %v1026_v46 = vpop.xlane.xlu1 %1025 }
 0x858   :  { %3704 = vrcp.f32 %v1026_v46  ;;  %v1376_v46 = vld [vmem:[%s4556_s6 + $0x68] sm:$0xff] }
 0x859   :  { %v1023_v47 = vpop.xlane.xlu0 %1022 }
 0x85a   :  { %3706 = vrcp.f32 %v1023_v47  ;;  %v1375_v47 = vld [vmem:[%s4556_s6 + $0x60] sm:$0xff] }
 0x85b   :  { %v587_v60 = vpop.xlane.xlu1 %586 }
 0x85d   :  { %v584_v59 = vpop.xlane.xlu0 %583 }
 0x85e   :  { %3708 = vrcp.f32 %v584_v59  ;;  %v1366_v59 = vld [vmem:[%s4556_s6 + $0x18] sm:$0xff] }
 0x85f   :  { %3710 = vrcp.f32 %v587_v60  ;;  %v1365_v60 = vld [vmem:[%s4556_s6 + $0x10] sm:$0xff] }
 0x865   :  { %v3705_v50 = vpop.eup %3704 }
 0x867   :  { %v3707_v53 = vpop.eup %3706 }
 0x86b   :  { %v3709_v61 = vpop.eup %3708 }
 0x86c   :  { %v3711_v63 = vpop.eup %3710  ;;  %v674_v2 = vmul.f32 %v3709_v61, %v4089_v18  ;;  %v1364_v61 = vld [vmem:[%s4556_s6 + $0x8] sm:$0xff] }
 0x86d   :  { %v676_v3 = vmul.f32 %v3711_v63, %v4087_v17  ;;  %v1363_v63 = vld [vmem:[%s4556_s6] sm:$0xff] }
 0x890   :  { %v3447_v51 = vpop.f32.mrf.mxu0 }
 0x891   :  { %v1114_v52 = vmul.f32 %v3705_v50, %v3447_v51  ;;  %v1372_v50 = vld [vmem:[%s4556_s6 + $0x48] sm:$0xff]  ;;  %v1371_v51 = vld [vmem:[%s4556_s6 + $0x40] sm:$0xff] }
 0x892   :  { %v1102_v55 = vpop.f32.mrf.mxu0 }
 0x893   :  { %v1112_v57 = vmul.f32 %v3707_v53, %v1102_v55  ;;  %1119 = vrot.lane.b32.xlu1 %v1114_v52, %s3763_s0  ;;  %v1370_v52 = vld [vmem:[%s4556_s6 + $0x38] sm:$0xff]  ;;  %v1369_v53 = vld [vmem:[%s4556_s6 + $0x30] sm:$0xff]  ;;  %v1368_v55 = vld [vmem:[%s4556_s6 + $0x28] sm:$0xff] }
 0x895   :  { %1117 = vrot.lane.b32.xlu0 %v1112_v57, %s3763_s0  ;;  %v1367_v57 = vld [vmem:[%s4556_s6 + $0x20] sm:$0xff] }
 0x905   :  { %v1120_v1 = vpop.permute.xlu1 %1119 }
 0x906   :  { %v1124_v6 = vsel %vm480_vm5, %v676_v3, %v1120_v1  ;;  %v3074_v1 = vld [vmem:[%s4552_s2 + $0x15] ss:$0 sm:$0xff] }
 0x907   :  { %v1118_v4 = vpop.permute.xlu0 %1117 }
 0x908   :  { %v1123_v5 = vsel %vm480_vm5, %v674_v2, %v1118_v4 }
 0x909   :  { %3456 = vmatprep.mubr.msk.f32.mxu1 %vm149_vm2, %v1123_v5 }
 0x90a   :  { %3457 = vmatmul.mubr.msk.f32.vlgmr.msra.gmra.mxu1 %vm149_vm2, %v1124_v6 }
 0x90b   :  { %3471 = vmatpush3.msra.mxu1 %v1378_v44 }
 0x90c   :  { %3472 = vmatprep.subr.mxu1 %v1377_v45 }
 0x90d   :  { %3473 = vmatpush3.msra.mxu1 %v1377_v45 }
 0x90e   :  { %3474 = vmatprep.subr.mxu1 %v1376_v46 }
 0x90f   :  { %3475 = vmatpush3.msra.mxu1 %v1376_v46 }
 0x910   :  { %3476 = vmatprep.subr.mxu1 %v1375_v47 }
 0x911   :  { %3477 = vmatpush3.msra.mxu1 %v1375_v47 }
 0x912   :  { %3478 = vmatprep.subr.mxu1 %v1374_v48 }
 0x913   :  { %3479 = vmatpush3.msra.mxu1 %v1374_v48 }
 0x914   :  { %3480 = vmatprep.subr.mxu1 %v1373_v49 }
 0x915   :  { %3481 = vmatpush3.msra.mxu1 %v1373_v49 }
 0x916   :  { %3482 = vmatprep.subr.mxu1 %v1372_v50 }
 0x917   :  { %3483 = vmatpush3.msra.mxu1 %v1372_v50 }
 0x918   :  { %3484 = vmatprep.subr.mxu1 %v1371_v51 }
 0x919   :  { %3485 = vmatpush3.msra.mxu1 %v1371_v51  ;;  %v3080_v51 = vld [vmem:[%s4552_s2 + $0x19] ss:$0 sm:$0xff] }
 0x91a   :  { %3486 = vmatprep.subr.mxu1 %v1370_v52 }
 0x91b   :  { %3487 = vmatpush3.msra.mxu1 %v1370_v52 }
 0x91c   :  { %3488 = vmatprep.subr.mxu1 %v1369_v53 }
 0x91d   :  { %3489 = vmatpush3.msra.mxu1 %v1369_v53 }
 0x91e   :  { %3490 = vmatprep.subr.mxu1 %v1368_v55 }
 0x91f   :  { %3491 = vmatpush3.msra.mxu1 %v1368_v55 }
 0x920   :  { %3492 = vmatprep.subr.mxu1 %v1367_v57 }
 0x921   :  { %3493 = vmatpush3.msra.mxu1 %v1367_v57 }
 0x922   :  { %3494 = vmatprep.subr.mxu1 %v1366_v59 }
 0x923   :  { %3495 = vmatpush3.msra.mxu1 %v1366_v59 }
 0x924   :  { %3496 = vmatprep.subr.mxu1 %v1365_v60 }
 0x925   :  { %3497 = vmatpush3.msra.mxu1 %v1365_v60  ;;  %v3081_v60 = vld [vmem:[%s4552_s2 + $0x1a] ss:$0 sm:$0xff] }
 0x926   :  { %3498 = vmatprep.subr.mxu1 %v1364_v61 }
 0x927   :  { %3499 = vmatpush3.msra.mxu1 %v1364_v61 }
 0x928   :  { %3500 = vmatprep.subr.mxu1 %v1363_v63 }
 0x929   :  { %3501 = vmatpush3.msra.mxu1 %v1363_v63 }
 0x9ca   :  { %v3458_v8 = vpop.f32.mrf.mxu1 }
 0x9cb   :  { %v1212_v9 = vadd.f32 %v3458_v8, %v3069_v7 }
 0x9cc   :  { %v1206_v10 = vpop.f32.mrf.mxu1 }
 0x9cd   :  { %v4136_v11 = vadd.f32 %v1212_v9, %v3938_v62  ;;  %v1207_v12 = vadd.f32 %v3069_v7, %v1206_v10 }
 0x9cf   :  { %v4139_v13 = vadd.f32 %v1207_v12, %v3934_v58  ;;  %v1222_v14 = vsel %vm153_vm3, %v4136_v11, 0.0 }
 0x9d0   :  { %1223 = vadd.xlane.f32.xlu0 %v1222_v14 }
 0x9d1   :  { %v1219_v15 = vsel %vm149_vm2, %v4139_v13, 0.0 }
 0x9d2   :  { %1220 = vadd.xlane.f32.xlu1 %v1219_v15 }
 0xa59   :  { %v1224_v16 = vpop.xlane.xlu0 %1223 }
 0xa5a   :  { %v1226_v17 = vmul.f32 0.03125, %v1224_v16 }
 0xa5b   :  { %v1221_v18 = vpop.xlane.xlu1 %1220 }
 0xa5c   :  { %v1228_v19 = vsub.f32 %v4136_v11, %v1226_v17  ;;  %v1225_v20 = vmul.f32 0.03125, %v1221_v18 }
 0xa5e   :  { %v1227_v62 = vsub.f32 %v4139_v13, %v1225_v20  ;;  %v1230_v21 = vmul.f32 %v1228_v19, %v1228_v19  ;;  %v3079_v20 = vld [vmem:[%s4552_s2 + $0x16] ss:$0 sm:$0xff] }
 0xa60   :  { %v1234_v58 = vsel %vm153_vm3, %v1230_v21, 0.0  ;;  %v1229_v22 = vmul.f32 %v1227_v62, %v1227_v62 }
 0xa61   :  { %1235 = vadd.xlane.f32.xlu1 %v1234_v58 }
 0xa62   :  { %v1231_v23 = vsel %vm149_vm2, %v1229_v22, 0.0 }
 0xa63   :  { %1232 = vadd.xlane.f32.xlu0 %v1231_v23 }
 0xaea   :  { %v1236_v28 = vpop.xlane.xlu1 %1235 }
 0xaeb   :  { %v1238_v29 = vmul.f32 0.03125, %v1236_v28 }
 0xaec   :  { %v1233_v30 = vpop.xlane.xlu0 %1232 }
 0xaed   :  { %v1240_v31 = vadd.f32 1e-05, %v1238_v29  ;;  %v1237_v32 = vmul.f32 0.03125, %v1233_v30 }
 0xaef   :  { %3712 = vrsqrt.f32 %v1240_v31  ;;  %v1239_v33 = vadd.f32 1e-05, %v1237_v32 }
 0xaf1   :  { %3714 = vrsqrt.f32 %v1239_v33 }
 0xafc   :  { %v3713_v34 = vpop.eup %3712 }
 0xafd   :  { %v1244_v36 = vmul.f32 %v3713_v34, %v1228_v19 }
 0xafe   :  { %v3715_v37 = vpop.eup %3714 }
 0xaff   :  { %v1243_v38 = vmul.f32 %v3715_v37, %v1227_v62  ;;  %v1250_v39 = vmul.f32 %v3072_v35, %v1244_v36  ;;  %v3115_v36 = vld [vmem:[%s4553_s3 + $0x138] sm:$0xff]  ;;  %v3084_v37 = vld [vmem:[%s4553_s3 + $0xd0] sm:$0xff] }
 0xb00   :  { %3563 = vmatprep.subr.mxu1 %v3115_v36 }
 0xb01   :  { %v1249_v41 = vmul.f32 %v3072_v35, %v1243_v38  ;;  %v1256_v43 = vadd.f32 %v3073_v40, %v1250_v39  ;;  %v3085_v35 = vld [vmem:[%s4553_s3 + $0xd8] sm:$0xff]  ;;  %v3114_v38 = vld [vmem:[%s4553_s3 + $0x130] sm:$0xff]  ;;  %v3083_v39 = vld [vmem:[%s4553_s3 + $0xc8] sm:$0xff] }
 0xb02   :  { %3505 = vmatprep.subr.mxu0 %v3085_v35 }
 0xb03   :  { %v1255_v42 = vadd.f32 %v3073_v40, %v1249_v41  ;;  %v3113_v40 = vld [vmem:[%s4553_s3 + $0x128] sm:$0xff]  ;;  %v3082_v41 = vld [vmem:[%s4553_s3 + $0xc0] sm:$0xff] }
 0xb05   :  { %3467 = vmatprep.mubr.msk.f32.mxu0 %vm149_vm2, %v1255_v42  ;;  %v3112_v42 = vld [vmem:[%s4553_s3 + $0x120] sm:$0xff] }
 0xb06   :  { %3468 = vmatmul.mubr.msk.f32.vlgmr.msra.gmra.mxu0 %vm149_vm2, %v1256_v43  ;;  %v3089_v43 = vld [vmem:[%s4553_s3 + $0x118] sm:$0xff] }
 0xb07   :  { %3506 = vmatpush3.msra.mxu0 %v3085_v35  ;;  %v3109_v35 = vld [vmem:[%s4553_s3 + $0xe8] sm:$0xff] }
 0xb08   :  { %3507 = vmatprep.subr.mxu0 %v3084_v37 }
 0xb09   :  { %3508 = vmatpush3.msra.mxu0 %v3084_v37  ;;  %v3119_v37 = vld [vmem:[%s4553_s3 + $0x178] sm:$0xff] }
 0xb0a   :  { %3509 = vmatprep.subr.mxu0 %v3083_v39 }
 0xb0b   :  { %3510 = vmatpush3.msra.mxu0 %v3083_v39  ;;  %v3117_v39 = vld [vmem:[%s4553_s3 + $0x168] sm:$0xff] }
 0xb0c   :  { %3511 = vmatprep.subr.mxu0 %v3082_v41 }
 0xb0d   :  { %3512 = vmatpush3.msra.mxu0 %v3082_v41 }
 0xb0e   :  { %3516 = vmatprep.subr.mxu0 %v3089_v43 }
 0xbc6   :  { %v3469_v2 = vpop.f32.mrf.mxu0 }
 0xbc7   :  { %v1344_v3 = vadd.f32 %v3469_v2, %v3074_v1  ;;  %v3087_v2 = vld [vmem:[%s4553_s3 + $0x108] sm:$0xff] }
 0xbc8   :  { %v1338_v4 = vpop.f32.mrf.mxu0 }
 0xbc9   :  { %v3078_v5 = vmul.f32 -1.702, %v1344_v3  ;;  %v1339_v6 = vadd.f32 %v3074_v1, %v1338_v4  ;;  %v3088_v1 = vld [vmem:[%s4553_s3 + $0x110] sm:$0xff]  ;;  %v3093_v4 = vld [vmem:[%s4553_s3 + $0x158] sm:$0xff] }
 0xbcb   :  { %v1353_v7 = vmul.f32 1.442695, %v3078_v5  ;;  %v3077_v8 = vmul.f32 -1.702, %v1339_v6  ;;  %v3092_v5 = vld [vmem:[%s4553_s3 + $0x150] sm:$0xff] }
 0xbcd   :  { %3716 = vpow2.f32 %v1353_v7  ;;  %v1351_v9 = vmul.f32 1.442695, %v3077_v8  ;;  %v3090_v7 = vld [vmem:[%s4553_s3 + $0x140] sm:$0xff] }
 0xbcf   :  { %3718 = vpow2.f32 %v1351_v9 }
 0xbda   :  { %v3717_v10 = vpop.eup %3716 }
 0xbdb   :  { %v1356_v12 = vadd.f32 1.0, %v3717_v10  ;;  %v3094_v10 = vld [vmem:[%s4552_s2 + $0x20] ss:$0 sm:$0xff] }
 0xbdc   :  { %v3719_v14 = vpop.eup %3718 }
 0xbdd   :  { %v1355_v15 = vadd.f32 1.0, %v3719_v14  ;;  %3720 = vrcp.f32 %v1356_v12 }
 0xbdf   :  { %3722 = vrcp.f32 %v1355_v15 }
 0xbea   :  { %v3721_v16 = vpop.eup %3720 }
 0xbeb   :  { %v1362_v19 = vmul.f32 %v3721_v16, %v1344_v3  ;;  %v3086_v3 = vld [vmem:[%s4553_s3 + $0x100] sm:$0xff] }
 0xbec   :  { %v3723_v17 = vpop.eup %3722 }
 0xbed   :  { %v1361_v18 = vmul.f32 %v3723_v17, %v1339_v6  ;;  %v3091_v6 = vld [vmem:[%s4553_s3 + $0x148] sm:$0xff] }
 0xbef   :  { %3502 = vmatprep.mubr.f32.mxu1 %v1361_v18 }
 0xbf0   :  { %3503 = vmatmul.mubr.f32.vlgmr.msra.gmra.mxu1 %v1362_v19 }
 0xbf1   :  { %3564 = vmatpush3.msra.mxu1 %v3115_v36  ;;  %v3108_v36 = vld [vmem:[%s4553_s3 + $0xe0] sm:$0xff] }
 0xbf2   :  { %3565 = vmatprep.subr.mxu1 %v3114_v38 }
 0xbf3   :  { %3566 = vmatpush3.msra.mxu1 %v3114_v38  ;;  %v3118_v38 = vld [vmem:[%s4553_s3 + $0x170] sm:$0xff] }
 0xbf4   :  { %3567 = vmatprep.subr.mxu1 %v3113_v40 }
 0xbf5   :  { %3568 = vmatpush3.msra.mxu1 %v3113_v40  ;;  %v3116_v40 = vld [vmem:[%s4553_s3 + $0x160] sm:$0xff] }
 0xbf6   :  { %3569 = vmatprep.subr.mxu1 %v3112_v42 }
 0xbf7   :  { %3570 = vmatpush3.msra.mxu1 %v3112_v42 }
 0xcb0   :  { %v3504_v62 = vpop.f32.mrf.mxu1 }
 0xcb1   :  { %v1456_v21 = vadd.f32 %v3504_v62, %v3079_v20 }
 0xcb2   :  { %v1450_v58 = vpop.f32.mrf.mxu1 }
 0xcb3   :  { %v4224_v22 = vadd.f32 %v1456_v21, %v4136_v11  ;;  %v1451_v23 = vadd.f32 %v3079_v20, %v1450_v58 }
 0xcb5   :  { %v4227_v24 = vadd.f32 %v1451_v23, %v4139_v13  ;;  %v1466_v25 = vsel %vm153_vm3, %v4224_v22, 0.0 }
 0xcb6   :  { %1467 = vadd.xlane.f32.xlu1 %v1466_v25 }
 0xcb7   :  { %v1463_v26 = vsel %vm149_vm2, %v4227_v24, 0.0 }
 0xcb8   :  { %1464 = vadd.xlane.f32.xlu0 %v1463_v26 }
 0xd3f   :  { %v1468_v27 = vpop.xlane.xlu1 %1467 }
 0xd40   :  { %v1470_v28 = vmul.f32 0.03125, %v1468_v27  ;;  %v3111_v27 = vld [vmem:[%s4553_s3 + $0xf8] sm:$0xff] }
 0xd41   :  { %v1465_v29 = vpop.xlane.xlu0 %1464 }
 0xd42   :  { %v1472_v30 = vsub.f32 %v4224_v22, %v1470_v28  ;;  %v1469_v31 = vmul.f32 0.03125, %v1465_v29 }
 0xd44   :  { %v1471_v11 = vsub.f32 %v4227_v24, %v1469_v31  ;;  %v1474_v32 = vmul.f32 %v1472_v30, %v1472_v30 }
 0xd46   :  { %v1478_v13 = vsel %vm153_vm3, %v1474_v32, 0.0  ;;  %v1473_v33 = vmul.f32 %v1471_v11, %v1471_v11 }
 0xd47   :  { %1479 = vadd.xlane.f32.xlu1 %v1478_v13 }
 0xd48   :  { %v1475_v34 = vsel %vm149_vm2, %v1473_v33, 0.0 }
 0xd49   :  { %1476 = vadd.xlane.f32.xlu0 %v1475_v34  ;;  %v3110_v34 = vld [vmem:[%s4553_s3 + $0xf0] sm:$0xff] }
 0xdd0   :  { %v1480_v44 = vpop.xlane.xlu1 %1479 }
 0xdd1   :  { %v1482_v45 = vmul.f32 0.03125, %v1480_v44  ;;  %v3120_v44 = vld [vmem:[%s4552_s2 + $0x21] ss:$0 sm:$0xff] }
 0xdd2   :  { %v1477_v46 = vpop.xlane.xlu0 %1476 }
 0xdd3   :  { %v1484_v47 = vadd.f32 1e-05, %v1482_v45  ;;  %v1481_v48 = vmul.f32 0.03125, %v1477_v46 }
 0xdd5   :  { %3724 = vrsqrt.f32 %v1484_v47  ;;  %v1483_v49 = vadd.f32 1e-05, %v1481_v48 }
 0xdd7   :  { %3726 = vrsqrt.f32 %v1483_v49 }
 0xde2   :  { %v3725_v50 = vpop.eup %3724 }
 0xde3   :  { %v1488_v52 = vmul.f32 %v3725_v50, %v1472_v30 }
 0xde4   :  { %v3727_v53 = vpop.eup %3726 }
 0xde5   :  { %v1487_v55 = vmul.f32 %v3727_v53, %v1471_v11  ;;  %v1494_v57 = vmul.f32 %v3080_v51, %v1488_v52 }
 0xde7   :  { %v1493_v59 = vmul.f32 %v3080_v51, %v1487_v55  ;;  %v4272_v63 = vadd.f32 %v3081_v60, %v1494_v57 }
 0xde9   :  { %v4270_v61 = vadd.f32 %v3081_v60, %v1493_v59 }
 0xdeb   :  { %3513 = vmatprep.mubr.msk.f32.mxu0 %vm149_vm2, %v4270_v61  ;;  %3571 = vmatprep.mubr.msk.f32.mxu1 %vm149_vm2, %v4270_v61 }
 0xdec   :  { %3514 = vmatmul.mubr.msk.f32.vlgmr.msra.gmra.mxu0 %vm149_vm2, %v4272_v63  ;;  %3572 = vmatmul.mubr.msk.f32.vlgmr.msra.gmra.mxu1 %vm149_vm2, %v4272_v63 }
 0xded   :  { %3517 = vmatpush3.msra.mxu0 %v3089_v43  ;;  %3524 = vmatprep.mubr.msk.f32.mxu0 %vm149_vm2, %v4270_v61 }
 0xdee   :  { %3518 = vmatprep.subr.mxu0 %v3088_v1 }
 0xdef   :  { %3519 = vmatpush3.msra.mxu0 %v3088_v1 }
 0xdf0   :  { %3520 = vmatprep.subr.mxu0 %v3087_v2 }
 0xdf1   :  { %3521 = vmatpush3.msra.mxu0 %v3087_v2 }
 0xdf2   :  { %3522 = vmatprep.subr.mxu0 %v3086_v3 }
 0xdf3   :  { %3523 = vmatpush3.msra.mxu0 %v3086_v3 }
 0xdf4   :  { %3525 = vmatmul.mubr.msk.f32.vlgmr.msra.gmra.mxu0 %vm149_vm2, %v4272_v63  ;;  %3527 = vmatprep.subr.mxu0 %v3093_v4 }
 0xdf5   :  { %3528 = vmatpush3.msra.mxu0 %v3093_v4  ;;  %3535 = vmatprep.mubr.msk.f32.mxu0 %vm149_vm2, %v4270_v61 }
 0xdf6   :  { %3529 = vmatprep.subr.mxu0 %v3092_v5 }
 0xdf7   :  { %3530 = vmatpush3.msra.mxu0 %v3092_v5 }
 0xdf8   :  { %3531 = vmatprep.subr.mxu0 %v3091_v6 }
 0xdf9   :  { %3532 = vmatpush3.msra.mxu0 %v3091_v6 }
 0xdfa   :  { %3533 = vmatprep.subr.mxu0 %v3090_v7 }
 0xdfb   :  { %3534 = vmatpush3.msra.mxu0 %v3090_v7  ;;  %v3137_v7 = vld [vmem:[%s4554_s4 + $0x38] sm:$0xff] }
 0xdfc   :  { %3536 = vmatmul.mubr.msk.f32.vlgmr.msra.gmra.mxu0 %vm149_vm2, %v4272_v63 }
 0xeac   :  { %v3515_v8 = vpop.f32.mrf.mxu0  ;;  %v3573_v9 = vpop.f32.mrf.mxu1 }
 0xead   :  { %3585 = vmatprep.subr.msk.mxu1 %vm480_vm5, %v3573_v9  ;;  %v1599_v18 = vadd.f32 %v3515_v8, %v3094_v10  ;;  %v3136_v8 = vld [vmem:[%s4554_s4 + $0x30] sm:$0xff] }
 0xeae   :  { %v1593_v12 = vpop.f32.mrf.mxu0  ;;  %v2106_v14 = vpop.f32.mrf.mxu1  ;;  %3586 = vmatpush3.xpose.msk.msra.mxu1 %vm480_vm5, %v3573_v9 }
 0xeaf   :  { %v1594_v15 = vadd.f32 %v3094_v10, %v1593_v12  ;;  %3587 = vmatprep.subr.msk.mxu1 %vm480_vm5, %v2106_v14  ;;  %v3135_v12 = vld [vmem:[%s4554_s4 + $0x28] sm:$0xff] }
 0xeb1   :  { %3542 = vmatprep.mubr.msk.f32.mxu0 %vm480_vm5, %v1594_v15 }
 0xeb2   :  { %3588 = vmatpush3.xpose.msk.msra.mxu1 %vm480_vm5, %v2106_v14  ;;  %v3134_v14 = vld [vmem:[%s4554_s4 + $0x20] sm:$0xff] }
 0xeb3   :  { %3599 = vmatprep.subr.mxu1 %v3137_v7 }
 0xeb4   :  { %v3526_v16 = vpop.f32.mrf.mxu0 }
 0xeb5   :  { %3538 = vmatprep.subr.msk.mxu0 %vm480_vm5, %v3526_v16 }
 0xeb6   :  { %v1668_v17 = vpop.f32.mrf.mxu0  ;;  %3539 = vmatpush3.xpose.msk.msra.mxu0 %vm480_vm5, %v3526_v16 }
 0xeb7   :  { %3540 = vmatprep.subr.msk.mxu0 %vm480_vm5, %v1668_v17 }
 0xeba   :  { %3541 = vmatpush3.xpose.msk.msra.mxu0 %vm480_vm5, %v1668_v17 }
 0xebc   :  { %v3537_v19 = vpop.f32.mrf.mxu0 }
 0xebd   :  { %3543 = vmatmul.mubr.msk.f32.vlgmr.msra.gmra.mxu0 %vm480_vm5, %v1599_v18  ;;  %3545 = vmatprep.subr.msk.mxu0 %vm594_vm4, %v3537_v19 }
 0xebe   :  { %v1743_v20 = vpop.f32.mrf.mxu0  ;;  %3546 = vmatpush3.msk.msra.mxu0 %vm594_vm4, %v3537_v19 }
 0xebf   :  { %3547 = vmatprep.subr.mxu0 %v1743_v20 }
 0xec0   :  { %3548 = vmatpush3.msra.mxu0 %v1743_v20 }
 0xec1   :  { %3552 = vmatprep.subr.mxu0 %v3111_v27 }
 0xf7d   :  { %v3544_v62 = vpop.f32.mrf.mxu0 }
 0xf7e   :  { %v1836_v21 = vadd.f32 %v3544_v62, %v4036_v54 }
 0xf7f   :  { %v1830_v58 = vpop.f32.mrf.mxu0 }
 0xf80   :  { %v1831_v23 = vadd.f32 %v1830_v58, %v4041_v56  ;;  %v1842_v25 = vsel %vm572_vm6, %v1836_v21, -inf }
 0xf81   :  { %1843 = vmax.xlane.f32.xlu1 %v1842_v25 }
 0xf82   :  { %v1839_v26 = vsel %vm568_vm7, %v1831_v23, -inf }
 0xf83   :  { %1840 = vmax.xlane.f32.xlu0 %v1839_v26 }
0x100a   :  { %v1844_v28 = vpop.xlane.xlu1 %1843 }
0x100b   :  { %v1846_v29 = vsub.f32 %v1836_v21, %v1844_v28 }
0x100c   :  { %v1841_v30 = vpop.xlane.xlu0 %1840 }
0x100d   :  { %v1845_v31 = vsub.f32 %v1831_v23, %v1841_v30  ;;  %v1849_v11 = vmul.f32 1.442695, %v1846_v29 }
0x100f   :  { %v1847_v32 = vmul.f32 1.442695, %v1845_v31  ;;  %v3138_v31 = vld [vmem:[%s4552_s2 + $0x1d] ss:$0 sm:$0xff] }
0x1011   :  { %3728 = vpow2.f32 %v1847_v32 }
0x1012   :  { %3730 = vpow2.f32 %v1849_v11 }
0x101e   :  { %v4333_v13 = vpop.eup %3728 }
0x101f   :  { %v4335_v33 = vpop.eup %3730  ;;  %3549 = vmatprep.mubr.msk.f32.mxu0 %vm568_vm7, %v4333_v13  ;;  %v1851_v6 = vsel %vm568_vm7, %v4333_v13, 0.0 }
0x1020   :  { %3550 = vmatmul.mubr.msk.f32.vlgmr.msra.gmra.mxu0 %vm568_vm7, %v4335_v33  ;;  %v1854_v5 = vsel %vm572_vm6, %v4335_v33, 0.0 }
0x1021   :  { %3553 = vmatpush3.msra.mxu0 %v3111_v27  ;;  %3560 = vmatprep.mubr.msk.f32.mxu0 %vm149_vm2, %v4270_v61 }
0x1022   :  { %3554 = vmatprep.subr.mxu0 %v3110_v34 }
0x1023   :  { %3555 = vmatpush3.msra.mxu0 %v3110_v34 }
0x1024   :  { %3556 = vmatprep.subr.mxu0 %v3109_v35 }
0x1025   :  { %3557 = vmatpush3.msra.mxu0 %v3109_v35 }
0x1026   :  { %3558 = vmatprep.subr.mxu0 %v3108_v36 }
0x1027   :  { %3559 = vmatpush3.msra.mxu0 %v3108_v36 }
0x1028   :  { %3561 = vmatmul.mubr.msk.f32.vlgmr.msra.gmra.mxu0 %vm149_vm2, %v4272_v63  ;;  %3574 = vmatprep.subr.mxu0 %v3119_v37 }
0x1029   :  { %3575 = vmatpush3.msra.mxu0 %v3119_v37  ;;  %3582 = vmatprep.mubr.msk.f32.mxu0 %vm149_vm2, %v4270_v61 }
0x102a   :  { %3576 = vmatprep.subr.mxu0 %v3118_v38 }
0x102b   :  { %3577 = vmatpush3.msra.mxu0 %v3118_v38 }
0x102c   :  { %3578 = vmatprep.subr.mxu0 %v3117_v39 }
0x102d   :  { %3579 = vmatpush3.msra.mxu0 %v3117_v39 }
0x102e   :  { %3580 = vmatprep.subr.mxu0 %v3116_v40 }
0x102f   :  { %3581 = vmatpush3.msra.mxu0 %v3116_v40 }
0x1030   :  { %3583 = vmatmul.mubr.msk.f32.vlgmr.msra.gmra.mxu0 %vm149_vm2, %v4272_v63 }
0x10e0   :  { %v4370_v41 = vpop.f32.mrf.mxu0 }
0x10e2   :  { %v4372_v42 = vpop.f32.mrf.mxu0 }
0x10e8   :  { %v3562_v43 = vpop.f32.mrf.mxu0 }
0x10e9   :  { %v2037_v47 = vadd.f32 %v3562_v43, %v3120_v44 }
0x10ea   :  { %v2031_v45 = vpop.f32.mrf.mxu0 }
0x10eb   :  { %v2032_v46 = vadd.f32 %v3120_v44, %v2031_v45 }
0x10ed   :  { %3589 = vmatprep.mubr.msk.f32.mxu1 %vm480_vm5, %v2032_v46  ;;  %v3146_v46 = vld [vmem:[%s4555_s5 + $0x38] sm:$0xff] }
0x10ee   :  { %3590 = vmatmul.mubr.msk.f32.vlgmr.msra.gmra.mxu1 %vm480_vm5, %v2037_v47  ;;  %v3145_v47 = vld [vmem:[%s4555_s5 + $0x30] sm:$0xff] }
0x10ef   :  { %3600 = vmatpush3.msra.mxu1 %v3137_v7  ;;  %v3165_v7 = vld [vmem:[%s4556_s6 + $0xe8] sm:$0xff] }
0x10f0   :  { %v3584_v48 = vpop.f32.mrf.mxu0  ;;  %3601 = vmatprep.subr.mxu1 %v3136_v8 }
0x10f1   :  { %3592 = vmatprep.subr.msk.mxu0 %vm594_vm4, %v3584_v48  ;;  %3602 = vmatpush3.msra.mxu1 %v3136_v8  ;;  %v3164_v8 = vld [vmem:[%s4556_s6 + $0xe0] sm:$0xff] }
0x10f2   :  { %v2181_v49 = vpop.f32.mrf.mxu0  ;;  %3593 = vmatpush3.msk.msra.mxu0 %vm594_vm4, %v3584_v48  ;;  %3603 = vmatprep.subr.mxu1 %v3135_v12  ;;  %v3144_v48 = vld [vmem:[%s4555_s5 + $0x28] sm:$0xff] }
0x10f3   :  { %3594 = vmatprep.subr.mxu0 %v2181_v49  ;;  %3604 = vmatpush3.msra.mxu1 %v3135_v12  ;;  %v3161_v12 = vld [vmem:[%s4556_s6 + $0xc8] sm:$0xff] }
0x10f4   :  { %3595 = vmatpush3.msra.mxu0 %v2181_v49  ;;  %3605 = vmatprep.subr.mxu1 %v3134_v14  ;;  %v3143_v49 = vld [vmem:[%s4555_s5 + $0x20] sm:$0xff] }
0x10f5   :  { %3606 = vmatpush3.msra.mxu1 %v3134_v14  ;;  %3610 = vmatprep.subr.mxu0 %v3146_v46  ;;  %v3160_v14 = vld [vmem:[%s4556_s6 + $0xc0] sm:$0xff] }
0x11ae   :  { %v3591_v50 = vpop.f32.mrf.mxu1 }
0x11af   :  { %v2274_v51 = vadd.f32 %v3591_v50, %v4036_v54 }
0x11b0   :  { %v2268_v52 = vpop.f32.mrf.mxu1 }
0x11b1   :  { %v2269_v53 = vadd.f32 %v2268_v52, %v4041_v56  ;;  %v2280_v55 = vsel %vm572_vm6, %v2274_v51, -inf }
0x11b2   :  { %2281 = vmax.xlane.f32.xlu1 %v2280_v55 }
0x11b3   :  { %v2277_v57 = vsel %vm568_vm7, %v2269_v53, -inf }
0x11b4   :  { %2278 = vmax.xlane.f32.xlu0 %v2277_v57 }
0x123b   :  { %v2282_v59 = vpop.xlane.xlu1 %2281 }
0x123c   :  { %v2284_v60 = vsub.f32 %v2274_v51, %v2282_v59 }
0x123d   :  { %v2279_v61 = vpop.xlane.xlu0 %2278 }
0x123e   :  { %v2287_v63 = vmul.f32 1.442695, %v2284_v60  ;;  %v2283_v1 = vsub.f32 %v2269_v53, %v2279_v61  ;;  %v3141_v60 = vld [vmem:[%s4552_s2 + $0x1b] ss:$0 sm:$0xff] }
0x1240   :  { %3732 = vpow2.f32 %v2287_v63  ;;  %v2285_v2 = vmul.f32 1.442695, %v2283_v1 }
0x1242   :  { %3734 = vpow2.f32 %v2285_v2 }
0x124d   :  { %v3733_v3 = vpop.eup %3732 }
0x124e   :  { %v2292_v54 = vsel %vm572_vm6, %v3733_v3, 0.0 }
0x124f   :  { %v3735_v4 = vpop.eup %3734  ;;  %2293 = vadd.xlane.f32.xlu1 %v2292_v54 }
0x1250   :  { %3596 = vmatprep.mubr.msk.f32.mxu0 %vm568_vm7, %v3735_v4  ;;  %v2289_v56 = vsel %vm568_vm7, %v3735_v4, 0.0 }
0x1251   :  { %3597 = vmatmul.mubr.msk.f32.vlgmr.msra.gmra.mxu0 %vm568_vm7, %v3733_v3  ;;  %2290 = vadd.xlane.f32.xlu0 %v2289_v56  ;;  %v3142_v3 = vld [vmem:[%s4552_s2 + $0x1c] ss:$0 sm:$0xff] }
0x1252   :  { %3611 = vmatpush3.msra.mxu0 %v3146_v46 }
0x1253   :  { %1855 = vadd.xlane.f32.xlu1 %v1854_v5  ;;  %3612 = vmatprep.subr.mxu0 %v3145_v47  ;;  %v3167_v5 = vld [vmem:[%s4556_s6 + $0xf8] sm:$0xff] }
0x1254   :  { %3613 = vmatpush3.msra.mxu0 %v3145_v47  ;;  %3621 = vmatprep.subr.mxu1 %v3167_v5 }
0x1255   :  { %1852 = vadd.xlane.f32.xlu0 %v1851_v6  ;;  %3614 = vmatprep.subr.mxu0 %v3144_v48  ;;  %v3166_v6 = vld [vmem:[%s4556_s6 + $0xf0] sm:$0xff] }
0x1256   :  { %3615 = vmatpush3.msra.mxu0 %v3144_v48 }
0x1257   :  { %3616 = vmatprep.subr.mxu0 %v3143_v49 }
0x1258   :  { %3617 = vmatpush3.msra.mxu0 %v3143_v49  ;;  %v31_v49 = vld [vmem:[%s4552_s2 + $0xa] sm:$0x3] }
0x12d8   :  { %v2294_v9 = vpop.xlane.xlu1 %2293 }
0x12d9   :  { %3736 = vrcp.f32 %v2294_v9  ;;  %v3163_v9 = vld [vmem:[%s4556_s6 + $0xd8] sm:$0xff] }
0x12da   :  { %v2291_v10 = vpop.xlane.xlu0 %2290 }
0x12db   :  { %3738 = vrcp.f32 %v2291_v10  ;;  %v3162_v10 = vld [vmem:[%s4556_s6 + $0xd0] sm:$0xff] }
0x12dc   :  { %v1856_v21 = vpop.xlane.xlu1 %1855 }
0x12de   :  { %v1853_v62 = vpop.xlane.xlu0 %1852 }
0x12df   :  { %3740 = vrcp.f32 %v1853_v62  ;;  %v3153_v62 = vld [vmem:[%s4556_s6 + $0x88] sm:$0xff] }
0x12e0   :  { %3742 = vrcp.f32 %v1856_v21  ;;  %v3152_v21 = vld [vmem:[%s4556_s6 + $0x80] sm:$0xff] }
0x12e6   :  { %v3737_v15 = vpop.eup %3736 }
0x12e8   :  { %v3739_v18 = vpop.eup %3738 }
0x12ec   :  { %v3741_v58 = vpop.eup %3740 }
0x12ed   :  { %v3743_v23 = vpop.eup %3742  ;;  %v1942_v26 = vmul.f32 %v3741_v58, %v4372_v42  ;;  %v2735_v58 = vld [vmem:[%s4557_s7 + $0x18] sm:$0xff] }
0x12ee   :  { %v1944_v27 = vmul.f32 %v3743_v23, %v4370_v41  ;;  %3656 = vmatprep.subr.mxu0 %v2735_v58  ;;  %v3147_v23 = vld [vmem:[%s4552_s2 + $0x1e] ss:$0 sm:$0xff] }
0x1311   :  { %v3598_v16 = vpop.f32.mrf.mxu0 }
0x1312   :  { %v2382_v17 = vmul.f32 %v3737_v15, %v3598_v16  ;;  %v3159_v15 = vld [vmem:[%s4556_s6 + $0xb8] sm:$0xff]  ;;  %v3158_v16 = vld [vmem:[%s4556_s6 + $0xb0] sm:$0xff] }
0x1313   :  { %v2370_v19 = vpop.f32.mrf.mxu0 }
0x1314   :  { %v2380_v20 = vmul.f32 %v3739_v18, %v2370_v19  ;;  %2387 = vrot.lane.b32.xlu1 %v2382_v17, %s3763_s0  ;;  %v3157_v17 = vld [vmem:[%s4556_s6 + $0xa8] sm:$0xff]  ;;  %v3156_v18 = vld [vmem:[%s4556_s6 + $0xa0] sm:$0xff]  ;;  %v3155_v19 = vld [vmem:[%s4556_s6 + $0x98] sm:$0xff] }
0x1316   :  { %2385 = vrot.lane.b32.xlu0 %v2380_v20, %s3763_s0  ;;  %v3154_v20 = vld [vmem:[%s4556_s6 + $0x90] sm:$0xff] }
0x1386   :  { %v2388_v25 = vpop.permute.xlu1 %2387 }
0x1387   :  { %v2392_v30 = vsel %vm480_vm5, %v1944_v27, %v2388_v25 }
0x1388   :  { %v2386_v28 = vpop.permute.xlu0 %2385 }
0x1389   :  { %v2391_v29 = vsel %vm480_vm5, %v1942_v26, %v2386_v28 }
0x138a   :  { %3607 = vmatprep.mubr.msk.f32.mxu1 %vm149_vm2, %v2391_v29 }
0x138b   :  { %3608 = vmatmul.mubr.msk.f32.vlgmr.msra.gmra.mxu1 %vm149_vm2, %v2392_v30 }
0x138c   :  { %3622 = vmatpush3.msra.mxu1 %v3167_v5 }
0x138d   :  { %3623 = vmatprep.subr.mxu1 %v3166_v6 }
0x138e   :  { %3624 = vmatpush3.msra.mxu1 %v3166_v6 }
0x138f   :  { %3625 = vmatprep.subr.mxu1 %v3165_v7 }
0x1390   :  { %3626 = vmatpush3.msra.mxu1 %v3165_v7 }
0x1391   :  { %3627 = vmatprep.subr.mxu1 %v3164_v8 }
0x1392   :  { %3628 = vmatpush3.msra.mxu1 %v3164_v8 }
0x1393   :  { %3629 = vmatprep.subr.mxu1 %v3163_v9 }
0x1394   :  { %3630 = vmatpush3.msra.mxu1 %v3163_v9 }
0x1395   :  { %3631 = vmatprep.subr.mxu1 %v3162_v10 }
0x1396   :  { %3632 = vmatpush3.msra.mxu1 %v3162_v10 }
0x1397   :  { %3633 = vmatprep.subr.mxu1 %v3161_v12 }
0x1398   :  { %3634 = vmatpush3.msra.mxu1 %v3161_v12 }
0x1399   :  { %3635 = vmatprep.subr.mxu1 %v3160_v14 }
0x139a   :  { %3636 = vmatpush3.msra.mxu1 %v3160_v14 }
0x139b   :  { %3637 = vmatprep.subr.mxu1 %v3159_v15 }
0x139c   :  { %3638 = vmatpush3.msra.mxu1 %v3159_v15 }
0x139d   :  { %3639 = vmatprep.subr.mxu1 %v3158_v16 }
0x139e   :  { %3640 = vmatpush3.msra.mxu1 %v3158_v16 }
0x139f   :  { %3641 = vmatprep.subr.mxu1 %v3157_v17 }
0x13a0   :  { %3642 = vmatpush3.msra.mxu1 %v3157_v17 }
0x13a1   :  { %3643 = vmatprep.subr.mxu1 %v3156_v18 }
0x13a2   :  { %3644 = vmatpush3.msra.mxu1 %v3156_v18 }
0x13a3   :  { %3645 = vmatprep.subr.mxu1 %v3155_v19 }
0x13a4   :  { %3646 = vmatpush3.msra.mxu1 %v3155_v19 }
0x13a5   :  { %3647 = vmatprep.subr.mxu1 %v3154_v20 }
0x13a6   :  { %3648 = vmatpush3.msra.mxu1 %v3154_v20 }
0x13a7   :  { %3649 = vmatprep.subr.mxu1 %v3153_v62 }
0x13a8   :  { %3650 = vmatpush3.msra.mxu1 %v3153_v62 }
0x13a9   :  { %3651 = vmatprep.subr.mxu1 %v3152_v21 }
0x13aa   :  { %3652 = vmatpush3.msra.mxu1 %v3152_v21 }
0x144b   :  { %v3609_v11 = vpop.f32.mrf.mxu1 }
0x144c   :  { %v2481_v32 = vadd.f32 %v3609_v11, %v3138_v31 }
0x144d   :  { %v2475_v13 = vpop.f32.mrf.mxu1 }
0x144e   :  { %v4417_v33 = vadd.f32 %v2481_v32, %v4224_v22  ;;  %v2476_v34 = vadd.f32 %v3138_v31, %v2475_v13 }
0x1450   :  { %v4420_v35 = vadd.f32 %v2476_v34, %v4227_v24  ;;  %v2491_v36 = vsel %vm153_vm3, %v4417_v33, 0.0 }
0x1451   :  { %2492 = vadd.xlane.f32.xlu0 %v2491_v36 }
0x1452   :  { %v2488_v37 = vsel %vm149_vm2, %v4420_v35, 0.0 }
0x1453   :  { %2489 = vadd.xlane.f32.xlu1 %v2488_v37 }
0x14da   :  { %v2493_v38 = vpop.xlane.xlu0 %2492 }
0x14db   :  { %v2495_v39 = vmul.f32 0.03125, %v2493_v38 }
0x14dc   :  { %v2490_v40 = vpop.xlane.xlu1 %2489 }
0x14dd   :  { %v2497_v41 = vsub.f32 %v4417_v33, %v2495_v39  ;;  %v2494_v42 = vmul.f32 0.03125, %v2490_v40 }
0x14df   :  { %v2496_v22 = vsub.f32 %v4420_v35, %v2494_v42  ;;  %v2499_v43 = vmul.f32 %v2497_v41, %v2497_v41  ;;  %v2733_v42 = vld [vmem:[%s4557_s7 + $0x8] sm:$0xff] }
0x14e1   :  { %v2503_v24 = vsel %vm153_vm3, %v2499_v43, 0.0  ;;  %v2498_v44 = vmul.f32 %v2496_v22, %v2496_v22  ;;  %v3168_v43 = vld [vmem:[%s4552_s2 + $0x1f] ss:$0 sm:$0xff] }
0x14e2   :  { %2504 = vadd.xlane.f32.xlu1 %v2503_v24 }
0x14e3   :  { %v2500_v45 = vsel %vm149_vm2, %v2498_v44, 0.0 }
0x14e4   :  { %2501 = vadd.xlane.f32.xlu0 %v2500_v45 }
0x156b   :  { %v2505_v50 = vpop.xlane.xlu1 %2504 }
0x156c   :  { %v2507_v51 = vmul.f32 0.03125, %v2505_v50 }
0x156d   :  { %v2502_v52 = vpop.xlane.xlu0 %2501 }
0x156e   :  { %v2509_v53 = vadd.f32 1e-05, %v2507_v51  ;;  %v2506_v55 = vmul.f32 0.03125, %v2502_v52 }
0x1570   :  { %3744 = vrsqrt.f32 %v2509_v53  ;;  %v2508_v57 = vadd.f32 1e-05, %v2506_v55 }
0x1572   :  { %3746 = vrsqrt.f32 %v2508_v57 }
0x157d   :  { %v3745_v59 = vpop.eup %3744 }
0x157e   :  { %v2513_v61 = vmul.f32 %v3745_v59, %v2497_v41  ;;  %v2734_v41 = vld [vmem:[%s4557_s7 + $0x10] sm:$0xff] }
0x157f   :  { %v3747_v63 = vpop.eup %3746 }
0x1580   :  { %v2512_v1 = vmul.f32 %v3747_v63, %v2496_v22  ;;  %v2519_v2 = vmul.f32 %v3141_v60, %v2513_v61  ;;  %v2732_v22 = vld [vmem:[%s4557_s7] sm:$0xff] }
0x1582   :  { %v2518_v54 = vmul.f32 %v3141_v60, %v2512_v1  ;;  %v2525_v56 = vadd.f32 %v3142_v3, %v2519_v2  ;;  %v3173_v2 = vld [vmem:[%s4552_s2 + $0xe] ss:$0 sm:$0xff] }
0x1584   :  { %v2524_v4 = vadd.f32 %v3142_v3, %v2518_v54  ;;  %v3174_v54 = vld [vmem:[%s4552_s2 + $0xf] ss:$0 sm:$0xff] }
0x1586   :  { %3618 = vmatprep.mubr.msk.f32.mxu0 %vm149_vm2, %v2524_v4 }
0x1587   :  { %3619 = vmatmul.mubr.msk.f32.vlgmr.msra.gmra.mxu0 %vm149_vm2, %v2525_v56 }
0x1588   :  { %3657 = vmatpush3.msra.mxu0 %v2735_v58 }
0x1589   :  { %3658 = vmatprep.subr.mxu0 %v2734_v41 }
0x158a   :  { %3659 = vmatpush3.msra.mxu0 %v2734_v41 }
0x158b   :  { %3660 = vmatprep.subr.mxu0 %v2733_v42 }
0x158c   :  { %3661 = vmatpush3.msra.mxu0 %v2733_v42 }
0x158d   :  { %3662 = vmatprep.subr.mxu0 %v2732_v22 }
0x158e   :  { %3663 = vmatpush3.msra.mxu0 %v2732_v22 }
0x158f   :  { %3667 = vmatprep.subr.mxu0 %v3762_v0 }
0x1647   :  { %v3620_v25 = vpop.f32.mrf.mxu0 }
0x1648   :  { %v2614_v26 = vadd.f32 %v3620_v25, %v3147_v23 }
0x1649   :  { %v2608_v27 = vpop.f32.mrf.mxu0 }
0x164a   :  { %v3151_v28 = vmul.f32 -1.702, %v2614_v26  ;;  %v2609_v29 = vadd.f32 %v3147_v23, %v2608_v27 }
0x164c   :  { %v2623_v30 = vmul.f32 1.442695, %v3151_v28  ;;  %v3150_v31 = vmul.f32 -1.702, %v2609_v29 }
0x164e   :  { %3748 = vpow2.f32 %v2623_v30  ;;  %v2621_v11 = vmul.f32 1.442695, %v3150_v31 }
0x1650   :  { %3750 = vpow2.f32 %v2621_v11 }
0x165b   :  { %v3749_v32 = vpop.eup %3748 }
0x165c   :  { %v2626_v13 = vadd.f32 1.0, %v3749_v32 }
0x165d   :  { %v3751_v34 = vpop.eup %3750 }
0x165e   :  { %v2625_v36 = vadd.f32 1.0, %v3751_v34  ;;  %3752 = vrcp.f32 %v2626_v13 }
0x1660   :  { %3754 = vrcp.f32 %v2625_v36 }
0x166b   :  { %v3753_v37 = vpop.eup %3752 }
0x166c   :  { %v2632_v40 = vmul.f32 %v3753_v37, %v2614_v26 }
0x166d   :  { %v3755_v38 = vpop.eup %3754 }
0x166e   :  { %v2631_v39 = vmul.f32 %v3755_v38, %v2609_v29 }
0x1670   :  { %3653 = vmatprep.mubr.f32.mxu1 %v2631_v39 }
0x1671   :  { %3654 = vmatmul.mubr.f32.vlgmr.msra.gmra.mxu1 %v2632_v40 }
0x1731   :  { %v3655_v24 = vpop.f32.mrf.mxu1 }
0x1732   :  { %v2727_v44 = vadd.f32 %v3655_v24, %v3168_v43 }
0x1733   :  { %v2721_v45 = vpop.f32.mrf.mxu1 }
0x1734   :  { %v2722_v46 = vadd.f32 %v3168_v43, %v2721_v45  ;;  %v2731_v48 = vadd.f32 %v2727_v44, %v4417_v33 }
0x1736   :  { %v2730_v47 = vadd.f32 %v2722_v46, %v4420_v35 }
0x1738   :  { %3664 = vmatprep.mubr.msk.f32.mxu0 %vm149_vm2, %v2730_v47 }
0x1739   :  { %3665 = vmatmul.mubr.msk.f32.vlgmr.msra.gmra.mxu0 %vm149_vm2, %v2731_v48 }
0x173a   :  { %3668 = vmatpush3.msk.msra.mxu0 %vm594_vm4, %v2731_v48  ;;  %3671 = vmatprep.mubr.msk.f32.mxu0 %vm3764_vm8, %v3762_v0 }
0x173b   :  { %3669 = vmatprep.subr.mxu0 %v3762_v0 }
0x173c   :  { %3670 = vmatpush3.msra.mxu0 %v2730_v47 }
0x173d   :  { %3672 = vmatmul.mubr.msk.f32.vlgmr.msra.gmra.mxu0 %vm568_vm7, %v31_v49  ;;  %3674 = vmatprep.subr.mxu0 %v3762_v0 }
0x173e   :  { %3675 = vmatpush3.msra.mxu0 %v2735_v58  ;;  %3682 = vmatprep.mubr.msk.f32.mxu0 %vm3764_vm8, %v3762_v0 }
0x173f   :  { %3676 = vmatprep.subr.mxu0 %v3762_v0 }
0x1740   :  { %3677 = vmatpush3.msra.mxu0 %v2734_v41 }
0x1741   :  { %3678 = vmatprep.subr.mxu0 %v3762_v0 }
0x1742   :  { %3679 = vmatpush3.msra.mxu0 %v2733_v42 }
0x1743   :  { %3680 = vmatprep.subr.mxu0 %v3762_v0 }
0x1744   :  { %3681 = vmatpush3.msra.mxu0 %v2732_v22 }
0x17f9   :  { %v3666_v33 = vpop.f32.mrf.mxu0 }
0x17fb   :  { %v2808_v35 = vpop.f32.mrf.mxu0 }
0x17fc   :  { %3008 = vst [vmem:[%s4558_s8] sm:$0xff] %v2808_v35 }
0x17fd   :  { %v2888_v50 = vpop.f32.mrf.mxu0 }
0x17fe   :  { %v2894_v51 = vsel %vm153_vm3, %v2888_v50, 0.0 }
0x17ff   :  { %2895 = vadd.xlane.f32.xlu0 %v2894_v51  ;;  %v3673_v52 = vpop.f32.mrf.mxu0 }
0x1888   :  { %v2896_v53 = vpop.xlane.xlu0 %2895 }
0x1889   :  { %v2897_v55 = vmul.f32 0.03125, %v2896_v53 }
0x188b   :  { %v2898_v57 = vsub.f32 %v2888_v50, %v2897_v55 }
0x188d   :  { %v2899_v59 = vmul.f32 %v2898_v57, %v2898_v57 }
0x188f   :  { %v2900_v60 = vsel %vm153_vm3, %v2899_v59, 0.0 }
0x1890   :  { %2901 = vadd.xlane.f32.xlu1 %v2900_v60 }
0x1919   :  { %v2902_v0 = vpop.xlane.xlu1 %2901 }
0x191a   :  { %v2903_v61 = vmul.f32 0.03125, %v2902_v0 }
0x191c   :  { %v2904_v63 = vadd.f32 1e-05, %v2903_v61 }
0x191e   :  { %3756 = vrsqrt.f32 %v2904_v63 }
0x192b   :  { %v3757_v1 = vpop.eup %3756 }
0x192c   :  { %v2906_v3 = vmul.f32 %v3757_v1, %v2898_v57 }
0x192e   :  { %v2911_v4 = vmul.f32 %v3173_v2, %v2906_v3 }
0x1930   :  { %v2916_v56 = vadd.f32 %v3174_v54, %v2911_v4 }
0x1932   :  { %3683 = vmatmul.mubr.msk.f32.vlgmr.msra.gmra.mxu0 %vm149_vm2, %v2916_v56 }
0x19f2   :  { %v2986_v5 = vpop.f32.mrf.mxu0 }
0x19f3   :  { %v2990_v6 = vmul.f32 %v2986_v5, %v2986_v5 }
0x19f4   :  { %v3684_v7 = vpop.f32.mrf.mxu0 }
0x19f5   :  { %v2991_v8 = vsel %vm594_vm4, %v2990_v6, 0.0 }
0x19f6   :  { %2992 = vadd.xlane.f32.xlu0 %v2991_v8 }
0x1a7f   :  { %v2993_v9 = vpop.xlane.xlu0 %2992 }
0x1a80   :  { %v2994_v10 = vadd.f32 1e-12, %v2993_v9 }
0x1a82   :  { %3758 = vrsqrt.f32 %v2994_v10  ;;  %vm2997_vm9 = vcmp.eq.f32.partialorder %v2994_v10, inf  ;;  %v3000_v15 = vand.u32 2147483648, %v2994_v10  ;;  %vm2999_vm10 = vcmp.eq.f32.partialorder %v2994_v10, 0.0 }
0x1a8f   :  { %v3759_v12 = vpop.eup %3758 }
0x1a90   :  { %v2996_v14 = vmul.f32 %v3759_v12, %v2994_v10 }
0x1a92   :  { %v2998_v16 = vsel %vm2997_vm9, %v2994_v10, %v2996_v14 }
0x1a93   :  { %v3001_v17 = vsel %vm2999_vm10, %v3000_v15, %v2998_v16 }
0x1a94   :  { %3760 = vrcp.f32 %v3001_v17 }
0x1aa1   :  { %v3761_v18 = vpop.eup %3760 }
0x1aa2   :  { %v3003_v19 = vmul.f32 %v3761_v18, %v2986_v5 }
0x1aa4   :  { %v3005_v20 = vrot.slane %v3003_v19, 6 }
0x1aa6   :  { %v3007_v62 = vsel %vm594_vm4, %v3666_v33, %v3005_v20 }
0x1aa7   :  { %3009 = vst [vmem:[%s4558_s8 + $0x8] sm:$0xf] %v3007_v62 }

</bundles_post_ra>
